<compile_context>
chip_gen: v5e
topology: v5e:2x2
jax: 0.10.0
libtpu: 0.0.40
codegen_flags: <defaults>
</compile_context>

<pallas_src>
import math

import jax
import jax.numpy as jnp
from jax import lax
from jax.experimental import pallas as pl
from jax.experimental.pallas import tpu as pltpu


def _round_up(v, m):
    return (v + m - 1) // m * m


# --------------------------------------------------------------------------------------
# Pallas kernels
# --------------------------------------------------------------------------------------
def _conv_relu_pool_kernel(p_ref, w_ref, b_ref, o_ref):
    """Batch block: conv (one matmul) + 2x2/stride-2 max pool + bias + ReLU.

    p_ref: (B, 4, P_pad, K_pad)  im2col patches; axis 1 = position in the 2x2 pool window
    w_ref: (K_pad, 128)          conv weights, zero-padded to 128 output lanes
    b_ref: (1, 128)              bias, zero-padded
    o_ref: (B, P_pad, 128)       pooled activations
    """
    b_blk, n_pos, p_pad, k = p_ref.shape          # static; n_pos == 4
    c = w_ref.shape[1]
    # One big MXU push: fold (batch block, pool position, pixel) into M.
    pat = p_ref[...].reshape(b_blk * n_pos * p_pad, k)
    y = jnp.dot(pat, w_ref[...], preferred_element_type=jnp.float32)
    y = y.reshape(b_blk, n_pos, p_pad, c)
    # Max over the 4 pool positions first, then add bias and ReLU once
    # (exactly equal to max_pool(relu(conv+b)) since b is shared per window).
    y = jnp.maximum(jnp.maximum(y[:, 0], y[:, 1]),
                    jnp.maximum(y[:, 2], y[:, 3]))
    o_ref[...] = jnp.maximum(y + b_ref[...], 0.0)


def _mlp_kernel(x_ref, w1_ref, b1_ref, w2_ref, b2_ref, w3_ref, b3_ref, o_ref):
    """Fused fc1 -> relu -> fc2 -> relu -> fc3; all widths padded to 128 lanes."""
    h = jnp.maximum(
        jnp.dot(x_ref[...], w1_ref[...], preferred_element_type=jnp.float32)
        + b1_ref[...], 0.0)
    h = jnp.maximum(
        jnp.dot(h, w2_ref[...], preferred_element_type=jnp.float32)
        + b2_ref[...], 0.0)
    o_ref[...] = (
        jnp.dot(h, w3_ref[...], preferred_element_type=jnp.float32) + b3_ref[...])


# --------------------------------------------------------------------------------------
# Pallas wrappers
# --------------------------------------------------------------------------------------
def _conv_relu_pool(patches, w_mat, b_row, b_blk):
    n, _, p_pad, k_pad = patches.shape            # n is already a multiple of b_blk
    c_pad = w_mat.shape[1]
    grid = (n // b_blk,)
    return pl.pallas_call(
        _conv_relu_pool_kernel,
        out_shape=jax.ShapeDtypeStruct((n, p_pad, c_pad), jnp.float32),
        grid=grid,
        in_specs=[
            pl.BlockSpec((b_blk, 4, p_pad, k_pad), lambda i: (i, 0, 0, 0)),
            pl.BlockSpec((k_pad, c_pad), lambda i: (0, 0)),
            pl.BlockSpec((1, c_pad), lambda i: (0, 0)),
        ],
        out_specs=pl.BlockSpec((b_blk, p_pad, c_pad), lambda i: (i, 0, 0)),
        compiler_params=pltpu.CompilerParams(dimension_semantics=("parallel",)),
    )(patches, w_mat, b_row)


def _mlp(x, w1, b1, w2, b2, w3, b3):
    n, k = x.shape
    k_pad = _round_up(k, 128)                     # 400 -> 512
    h1 = _round_up(w1.shape[1], 128)              # 120 -> 128
    h2 = _round_up(w2.shape[1], 128)              # 84  -> 128
    c_out = _round_up(w3.shape[1], 128)           # 10  -> 128
    n_rows = _round_up(n, 8)                      # full sublanes

    x_p = jnp.pad(x, ((0, n_rows - n), (0, k_pad - k)))
    w1p = jnp.pad(w1, ((0, k_pad - w1.shape[0]), (0, h1 - w1.shape[1])))
    b1p = jnp.pad(b1.reshape(1, -1), ((0, 0), (0, h1 - b1.shape[0])))
    w2p = jnp.pad(w2, ((0, h1 - w2.shape[0]), (0, h2 - w2.shape[1])))
    b2p = jnp.pad(b2.reshape(1, -1), ((0, 0), (0, h2 - b2.shape[0])))
    w3p = jnp.pad(w3, ((0, h2 - w3.shape[0]), (0, c_out - w3.shape[1])))
    b3p = jnp.pad(b3.reshape(1, -1), ((0, 0), (0, c_out - b3.shape[0])))

    y = pl.pallas_call(
        _mlp_kernel,
        out_shape=jax.ShapeDtypeStruct((n_rows, c_out), jnp.float32),
    )(x_p, w1p, b1p, w2p, b2p, w3p, b3p)
    return y[:n, :w3.shape[1]]


# --------------------------------------------------------------------------------------
# Plain-JAX glue (layout plumbing only)
# --------------------------------------------------------------------------------------
def _im2col_pool_layout(x_nhwc, ksize, p_pad, k_pad):
    """5x5 'VALID' conv patches regrouped per 2x2 pool window, zero-padded to
    (N, 4, P_pad, K_pad).  Feature axis flattened in (cin, kh, kw) order to match the
    PyTorch (Cout, Cin*KH*KW) weight reshape."""
    n, h, w, cin = x_nhwc.shape
    ho, wo = h - ksize + 1, w - ksize + 1
    k = cin * ksize * ksize
    cols = [x_nhwc[:, kh:kh + ho, kw:kw + wo, :]
            for kh in range(ksize) for kw in range(ksize)]
    patches = jnp.stack(cols, axis=-1)                       # (N, Ho, Wo, Cin, k*k)
    patches = patches.reshape(n, ho, wo, k)
    hp, wp = ho // 2, wo // 2
    patches = patches.reshape(n, hp, 2, wp, 2, k)
    patches = patches.transpose(0, 2, 4, 1, 3, 5)            # (N, 2, 2, Hp, Wp, K)
    patches = patches.reshape(n, 4, hp * wp, k)
    patches = jnp.pad(patches,
                      ((0, 0), (0, 0), (0, p_pad - hp * wp), (0, k_pad - k)))
    return patches, hp, wp


def conv_relu_pool_layer(x_nhwc, w_oihw, b, b_blk):
    cout, cin, kh, kw = w_oihw.shape
    k = cin * kh * kw
    ho = x_nhwc.shape[1] - kh + 1
    p = (ho // 2) * (ho // 2)
    p_pad = _round_up(p, 8)
    k_pad = _round_up(k, 128)
    c_pad = _round_up(cout, 128)

    patches, hp, wp = _im2col_pool_layout(x_nhwc, kh, p_pad, k_pad)
    w_mat = w_oihw.reshape(cout, k).T                         # (K, Cout)
    w_mat = jnp.pad(w_mat, ((0, k_pad - k), (0, c_pad - cout)))
    b_row = jnp.pad(b.reshape(1, cout), ((0, 0), (0, c_pad - cout)))

    y = _conv_relu_pool(patches, w_mat, b_row, b_blk)         # (N, P_pad, 128)
    y = y[:, :hp * wp, :cout]
    return y.reshape(x_nhwc.shape[0], hp, wp, cout)           # NHWC


def net_forward(params, x_nchw):
    n = x_nchw.shape[0]
    # Batch block: amortize per-grid-step overhead, but keep >= 2 parallel steps for
    # v7x's two TensorCores; cap at 8 samples/step to stay well inside scoped VMEM.
    b_blk = max(1, min(8, pl.cdiv(n, 2)))
    n_pad = pl.cdiv(n, b_blk) * b_blk
    if n_pad != n:
        x_nchw = jnp.pad(x_nchw, ((0, n_pad - n), (0, 0), (0, 0), (0, 0)))

    x = jnp.transpose(x_nchw, (0, 2, 3, 1))                            # NCHW -> NHWC
    x = conv_relu_pool_layer(x, params["conv1_w"], params["conv1_b"], b_blk)  # (Np,14,14,6)
    x = conv_relu_pool_layer(x, params["conv2_w"], params["conv2_b"], b_blk)  # (Np,5,5,16)
    # PyTorch's x.view(-1, 16*5*5) flattens NCHW in (c, h, w) order:
    x = jnp.transpose(x, (0, 3, 1, 2)).reshape(n_pad, -1)              # (Np, 400)
    y = _mlp(x, params["fc1_w"], params["fc1_b"],
             params["fc2_w"], params["fc2_b"],
             params["fc3_w"], params["fc3_b"])
    return y[:n]
    # TODO(synk): a fully fused single pallas_call (conv1+pool+im2col+conv2+pool+MLP,
    # activations VMEM-resident) would remove the remaining XLA im2col/launch overhead.


# --------------------------------------------------------------------------------------
# Deterministic parameter init (PyTorch-style uniform(-1/sqrt(fan_in), 1/sqrt(fan_in)))
# --------------------------------------------------------------------------------------
def _uniform(key, shape, bound):
    return jax.random.uniform(key, shape, jnp.float32, -bound, bound)


def init_params(key):
    ks = jax.random.split(key, 10)
    p = {}
    p["conv1_w"] = _uniform(ks[0], (6, 1, 5, 5), 1.0 / math.sqrt(1 * 5 * 5))
    p["conv1_b"] = _uniform(ks[1], (6,), 1.0 / math.sqrt(1 * 5 * 5))
    p["conv2_w"] = _uniform(ks[2], (16, 6, 5, 5), 1.0 / math.sqrt(6 * 5 * 5))
    p["conv2_b"] = _uniform(ks[3], (16,), 1.0 / math.sqrt(6 * 5 * 5))
    p["fc1_w"] = _uniform(ks[4], (400, 120), 1.0 / math.sqrt(400))   # stored (in, out)
    p["fc1_b"] = _uniform(ks[5], (120,), 1.0 / math.sqrt(400))
    p["fc2_w"] = _uniform(ks[6], (120, 84), 1.0 / math.sqrt(120))
    p["fc2_b"] = _uniform(ks[7], (84,), 1.0 / math.sqrt(120))
    p["fc3_w"] = _uniform(ks[8], (84, 10), 1.0 / math.sqrt(84))
    p["fc3_b"] = _uniform(ks[9], (10,), 1.0 / math.sqrt(84))
    return p


# --------------------------------------------------------------------------------------
# Pure-JAX reference (sanity check only)
# --------------------------------------------------------------------------------------
def ref_forward(params, x_nchw):
    dn = ("NCHW", "OIHW", "NCHW")
    y = lax.conv_general_dilated(x_nchw, params["conv1_w"], (1, 1), "VALID",
                                 dimension_numbers=dn)
    y = jnp.maximum(y + params["conv1_b"][None, :, None, None], 0.0)
    n, c, h, w = y.shape
    y = y.reshape(n, c, h // 2, 2, w // 2, 2).max(axis=(3, 5))
    y = lax.conv_general_dilated(y, params["conv2_w"], (1, 1), "VALID",
                                 dimension_numbers=dn)
    y = jnp.maximum(y + params["conv2_b"][None, :, None, None], 0.0)
    n, c, h, w = y.shape
    y = y.reshape(n, c, h // 2, 2, w // 2, 2).max(axis=(3, 5))
    y = y.reshape(n, -1)
    y = jnp.maximum(y @ params["fc1_w"] + params["fc1_b"], 0.0)
    y = jnp.maximum(y @ params["fc2_w"] + params["fc2_b"], 0.0)
    return y @ params["fc3_w"] + params["fc3_b"]


if __name__ == "__main__":
    key = jax.random.PRNGKey(0)
    k_x, k_p = jax.random.split(key)
    params = init_params(k_p)
    # LeNet expects 32x32 single-channel input: (N=2, C=1, H=32, W=32), NCHW like PyTorch.
    x = jax.random.normal(k_x, (2, 1, 32, 32), jnp.float32)

    out = jax.jit(net_forward)(params, x)
    out = jax.block_until_ready(out)
    assert out.shape == (2, 10), out.shape

    ref = ref_forward(params, x)
    err = float(jnp.max(jnp.abs(out - ref)))
    assert err < 5e-2, f"max abs diff vs reference too large: {err}"

    print("KERNEL_OK")
</pallas_src>

<mosaic_0001>
module attributes {stable_mosaic.version = 11 : i64} {
  func.func @_conv_relu_pool_kernel(%arg0: i32, %arg1: memref<1x4x200x128xf32, #tpu.memory_space<vmem>>, %arg2: memref<128x128xf32, #tpu.memory_space<vmem>>, %arg3: memref<1x128xf32, #tpu.memory_space<vmem>>, %arg4: memref<1x200x128xf32, #tpu.memory_space<vmem>>) attributes {dimension_semantics = [#tpu.dimension_semantics<parallel>], iteration_bounds = array<i64: 2>, scalar_prefetch = 0 : i64, scratch_operands = 0 : i64, tpu.core_type = #tpu.core_type<tc>, window_params = [{transform_indices = @transform_0, window_bounds = array<i64: 1, 4, 200, 128>}, {pipeline_mode = #tpu.pipeline_mode<synchronous>, transform_indices = @transform_1, window_bounds = array<i64: 128, 128>}, {pipeline_mode = #tpu.pipeline_mode<synchronous>, transform_indices = @transform_2, window_bounds = array<i64: 1, 128>}, {transform_indices = @transform_3, window_bounds = array<i64: 1, 200, 128>}]} {
    %c0 = arith.constant 0 : index
    %c0_0 = arith.constant 0 : index
    %c0_1 = arith.constant 0 : index
    %c0_2 = arith.constant 0 : index
    %0 = vector.load %arg1[%c0, %c0_0, %c0_1, %c0_2] : memref<1x4x200x128xf32, #tpu.memory_space<vmem>>, vector<1x4x200x128xf32>
    %1 = vector.shape_cast %0 : vector<1x4x200x128xf32> to vector<800x128xf32>
    %c0_3 = arith.constant 0 : index
    %c0_4 = arith.constant 0 : index
    %2 = vector.load %arg2[%c0_3, %c0_4] : memref<128x128xf32, #tpu.memory_space<vmem>>, vector<128x128xf32>
    %cst = arith.constant dense<0.000000e+00> : vector<800x128xf32>
    %3 = tpu.matmul %1, %2, %cst {dimension_numbers = #tpu.dot_dimension_numbers<[1], [0], [0], [1], [0, 0, 1, 1], [], []>} : vector<800x128xf32>, vector<128x128xf32>, vector<800x128xf32> -> vector<800x128xf32>
    %4 = vector.shape_cast %3 : vector<800x128xf32> to vector<1x4x200x128xf32>
    %5 = vector.extract_strided_slice %4 {offsets = [0, 0, 0, 0], sizes = [1, 1, 200, 128], strides = [1, 1, 1, 1]} : vector<1x4x200x128xf32> to vector<1x1x200x128xf32>
    %6 = vector.shape_cast %5 : vector<1x1x200x128xf32> to vector<1x200x128xf32>
    %7 = vector.extract_strided_slice %4 {offsets = [0, 1, 0, 0], sizes = [1, 1, 200, 128], strides = [1, 1, 1, 1]} : vector<1x4x200x128xf32> to vector<1x1x200x128xf32>
    %8 = vector.shape_cast %7 : vector<1x1x200x128xf32> to vector<1x200x128xf32>
    %9 = arith.maximumf %6, %8 : vector<1x200x128xf32>
    %10 = vector.extract_strided_slice %4 {offsets = [0, 2, 0, 0], sizes = [1, 1, 200, 128], strides = [1, 1, 1, 1]} : vector<1x4x200x128xf32> to vector<1x1x200x128xf32>
    %11 = vector.shape_cast %10 : vector<1x1x200x128xf32> to vector<1x200x128xf32>
    %12 = vector.extract_strided_slice %4 {offsets = [0, 3, 0, 0], sizes = [1, 1, 200, 128], strides = [1, 1, 1, 1]} : vector<1x4x200x128xf32> to vector<1x1x200x128xf32>
    %13 = vector.shape_cast %12 : vector<1x1x200x128xf32> to vector<1x200x128xf32>
    %14 = arith.maximumf %11, %13 : vector<1x200x128xf32>
    %15 = arith.maximumf %9, %14 : vector<1x200x128xf32>
    %c0_5 = arith.constant 0 : index
    %c0_6 = arith.constant 0 : index
    %16 = vector.load %arg3[%c0_5, %c0_6] : memref<1x128xf32, #tpu.memory_space<vmem>>, vector<1x128xf32>
    %17 = vector.shape_cast %16 : vector<1x128xf32> to vector<1x1x128xf32>
    %18 = vector.broadcast %17 : vector<1x1x128xf32> to vector<1x200x128xf32>
    %19 = arith.addf %15, %18 : vector<1x200x128xf32>
    %cst_7 = arith.constant 0.000000e+00 : f32
    %20 = vector.broadcast %cst_7 : f32 to vector<1x200x128xf32>
    %21 = arith.maximumf %19, %20 : vector<1x200x128xf32>
    %c0_8 = arith.constant 0 : index
    %c0_9 = arith.constant 0 : index
    %c0_10 = arith.constant 0 : index
    %22 = vector.load %arg4[%c0_8, %c0_9, %c0_10] : memref<1x200x128xf32, #tpu.memory_space<vmem>>, vector<1x200x128xf32>
    tpu.vector_store %arg4[%c0_8, %c0_9, %c0_10], %21 {strides = array<i32>} : memref<1x200x128xf32, #tpu.memory_space<vmem>>, vector<1x200x128xf32>,
    return
  }
  func.func @transform_0(%arg0: i32) -> (i32, i32, i32, i32) {
    %c0_i32 = arith.constant 0 : i32
    %c0_i32_0 = arith.constant 0 : i32
    %c0_i32_1 = arith.constant 0 : i32
    %c0_i32_2 = arith.constant 0 : i32
    return %arg0, %c0_i32, %c0_i32_0, %c0_i32_1 : i32, i32, i32, i32
  }
  func.func @transform_1(%arg0: i32) -> (i32, i32) {
    %c0_i32 = arith.constant 0 : i32
    %c0_i32_0 = arith.constant 0 : i32
    %c0_i32_1 = arith.constant 0 : i32
    return %c0_i32, %c0_i32_0 : i32, i32
  }
  func.func @transform_2(%arg0: i32) -> (i32, i32) {
    %c0_i32 = arith.constant 0 : i32
    %c0_i32_0 = arith.constant 0 : i32
    %c0_i32_1 = arith.constant 0 : i32
    return %c0_i32, %c0_i32_0 : i32, i32
  }
  func.func @transform_3(%arg0: i32) -> (i32, i32, i32) {
    %c0_i32 = arith.constant 0 : i32
    %c0_i32_0 = arith.constant 0 : i32
    %c0_i32_1 = arith.constant 0 : i32
    return %arg0, %c0_i32, %c0_i32_0 : i32, i32, i32
  }
}

module attributes {stable_mosaic.version = 11 : i64} {
  func.func @_conv_relu_pool_kernel(%arg0: i32, %arg1: memref<1x4x32x256xf32, #tpu.memory_space<vmem>>, %arg2: memref<256x128xf32, #tpu.memory_space<vmem>>, %arg3: memref<1x128xf32, #tpu.memory_space<vmem>>, %arg4: memref<1x32x128xf32, #tpu.memory_space<vmem>>) attributes {dimension_semantics = [#tpu.dimension_semantics<parallel>], iteration_bounds = array<i64: 2>, scalar_prefetch = 0 : i64, scratch_operands = 0 : i64, tpu.core_type = #tpu.core_type<tc>, window_params = [{transform_indices = @transform_0, window_bounds = array<i64: 1, 4, 32, 256>}, {pipeline_mode = #tpu.pipeline_mode<synchronous>, transform_indices = @transform_1, window_bounds = array<i64: 256, 128>}, {pipeline_mode = #tpu.pipeline_mode<synchronous>, transform_indices = @transform_2, window_bounds = array<i64: 1, 128>}, {transform_indices = @transform_3, window_bounds = array<i64: 1, 32, 128>}]} {
    %c0 = arith.constant 0 : index
    %c0_0 = arith.constant 0 : index
    %c0_1 = arith.constant 0 : index
    %c0_2 = arith.constant 0 : index
    %0 = vector.load %arg1[%c0, %c0_0, %c0_1, %c0_2] : memref<1x4x32x256xf32, #tpu.memory_space<vmem>>, vector<1x4x32x256xf32>
    %1 = vector.shape_cast %0 : vector<1x4x32x256xf32> to vector<128x256xf32>
    %c0_3 = arith.constant 0 : index
    %c0_4 = arith.constant 0 : index
    %2 = vector.load %arg2[%c0_3, %c0_4] : memref<256x128xf32, #tpu.memory_space<vmem>>, vector<256x128xf32>
    %cst = arith.constant dense<0.000000e+00> : vector<128x128xf32>
    %3 = tpu.matmul %1, %2, %cst {dimension_numbers = #tpu.dot_dimension_numbers<[1], [0], [0], [1], [0, 0, 1, 1], [], []>} : vector<128x256xf32>, vector<256x128xf32>, vector<128x128xf32> -> vector<128x128xf32>
    %4 = vector.shape_cast %3 : vector<128x128xf32> to vector<1x4x32x128xf32>
    %5 = vector.extract_strided_slice %4 {offsets = [0, 0, 0, 0], sizes = [1, 1, 32, 128], strides = [1, 1, 1, 1]} : vector<1x4x32x128xf32> to vector<1x1x32x128xf32>
    %6 = vector.shape_cast %5 : vector<1x1x32x128xf32> to vector<1x32x128xf32>
    %7 = vector.extract_strided_slice %4 {offsets = [0, 1, 0, 0], sizes = [1, 1, 32, 128], strides = [1, 1, 1, 1]} : vector<1x4x32x128xf32> to vector<1x1x32x128xf32>
    %8 = vector.shape_cast %7 : vector<1x1x32x128xf32> to vector<1x32x128xf32>
    %9 = arith.maximumf %6, %8 : vector<1x32x128xf32>
    %10 = vector.extract_strided_slice %4 {offsets = [0, 2, 0, 0], sizes = [1, 1, 32, 128], strides = [1, 1, 1, 1]} : vector<1x4x32x128xf32> to vector<1x1x32x128xf32>
    %11 = vector.shape_cast %10 : vector<1x1x32x128xf32> to vector<1x32x128xf32>
    %12 = vector.extract_strided_slice %4 {offsets = [0, 3, 0, 0], sizes = [1, 1, 32, 128], strides = [1, 1, 1, 1]} : vector<1x4x32x128xf32> to vector<1x1x32x128xf32>
    %13 = vector.shape_cast %12 : vector<1x1x32x128xf32> to vector<1x32x128xf32>
    %14 = arith.maximumf %11, %13 : vector<1x32x128xf32>
    %15 = arith.maximumf %9, %14 : vector<1x32x128xf32>
    %c0_5 = arith.constant 0 : index
    %c0_6 = arith.constant 0 : index
    %16 = vector.load %arg3[%c0_5, %c0_6] : memref<1x128xf32, #tpu.memory_space<vmem>>, vector<1x128xf32>
    %17 = vector.shape_cast %16 : vector<1x128xf32> to vector<1x1x128xf32>
    %18 = vector.broadcast %17 : vector<1x1x128xf32> to vector<1x32x128xf32>
    %19 = arith.addf %15, %18 : vector<1x32x128xf32>
    %cst_7 = arith.constant 0.000000e+00 : f32
    %20 = vector.broadcast %cst_7 : f32 to vector<1x32x128xf32>
    %21 = arith.maximumf %19, %20 : vector<1x32x128xf32>
    %c0_8 = arith.constant 0 : index
    %c0_9 = arith.constant 0 : index
    %c0_10 = arith.constant 0 : index
    %22 = vector.load %arg4[%c0_8, %c0_9, %c0_10] : memref<1x32x128xf32, #tpu.memory_space<vmem>>, vector<1x32x128xf32>
    tpu.vector_store %arg4[%c0_8, %c0_9, %c0_10], %21 {strides = array<i32>} : memref<1x32x128xf32, #tpu.memory_space<vmem>>, vector<1x32x128xf32>,
    return
  }
  func.func @transform_0(%arg0: i32) -> (i32, i32, i32, i32) {
    %c0_i32 = arith.constant 0 : i32
    %c0_i32_0 = arith.constant 0 : i32
    %c0_i32_1 = arith.constant 0 : i32
    %c0_i32_2 = arith.constant 0 : i32
    return %arg0, %c0_i32, %c0_i32_0, %c0_i32_1 : i32, i32, i32, i32
  }
  func.func @transform_1(%arg0: i32) -> (i32, i32) {
    %c0_i32 = arith.constant 0 : i32
    %c0_i32_0 = arith.constant 0 : i32
    %c0_i32_1 = arith.constant 0 : i32
    return %c0_i32, %c0_i32_0 : i32, i32
  }
  func.func @transform_2(%arg0: i32) -> (i32, i32) {
    %c0_i32 = arith.constant 0 : i32
    %c0_i32_0 = arith.constant 0 : i32
    %c0_i32_1 = arith.constant 0 : i32
    return %c0_i32, %c0_i32_0 : i32, i32
  }
  func.func @transform_3(%arg0: i32) -> (i32, i32, i32) {
    %c0_i32 = arith.constant 0 : i32
    %c0_i32_0 = arith.constant 0 : i32
    %c0_i32_1 = arith.constant 0 : i32
    return %arg0, %c0_i32, %c0_i32_0 : i32, i32, i32
  }
}

module attributes {stable_mosaic.version = 11 : i64} {
  func.func @_mlp_kernel(%arg0: memref<8x512xf32, #tpu.memory_space<vmem>>, %arg1: memref<512x128xf32, #tpu.memory_space<vmem>>, %arg2: memref<1x128xf32, #tpu.memory_space<vmem>>, %arg3: memref<128x128xf32, #tpu.memory_space<vmem>>, %arg4: memref<1x128xf32, #tpu.memory_space<vmem>>, %arg5: memref<128x128xf32, #tpu.memory_space<vmem>>, %arg6: memref<1x128xf32, #tpu.memory_space<vmem>>, %arg7: memref<8x128xf32, #tpu.memory_space<vmem>>) attributes {dimension_semantics = [], scalar_prefetch = 0 : i64, scratch_operands = 0 : i64, tpu.core_type = #tpu.core_type<tc>} {
    %c0 = arith.constant 0 : index
    %c0_0 = arith.constant 0 : index
    %0 = vector.load %arg0[%c0, %c0_0] : memref<8x512xf32, #tpu.memory_space<vmem>>, vector<8x512xf32>
    %c0_1 = arith.constant 0 : index
    %c0_2 = arith.constant 0 : index
    %1 = vector.load %arg1[%c0_1, %c0_2] : memref<512x128xf32, #tpu.memory_space<vmem>>, vector<512x128xf32>
    %cst = arith.constant dense<0.000000e+00> : vector<8x128xf32>
    %2 = tpu.matmul %0, %1, %cst {dimension_numbers = #tpu.dot_dimension_numbers<[1], [0], [0], [1], [0, 0, 1, 1], [], []>} : vector<8x512xf32>, vector<512x128xf32>, vector<8x128xf32> -> vector<8x128xf32>
    %c0_3 = arith.constant 0 : index
    %c0_4 = arith.constant 0 : index
    %3 = vector.load %arg2[%c0_3, %c0_4] : memref<1x128xf32, #tpu.memory_space<vmem>>, vector<1x128xf32>
    %4 = vector.broadcast %3 : vector<1x128xf32> to vector<8x128xf32>
    %5 = arith.addf %2, %4 : vector<8x128xf32>
    %cst_5 = arith.constant 0.000000e+00 : f32
    %6 = vector.broadcast %cst_5 : f32 to vector<8x128xf32>
    %7 = arith.maximumf %5, %6 : vector<8x128xf32>
    %c0_6 = arith.constant 0 : index
    %c0_7 = arith.constant 0 : index
    %8 = vector.load %arg3[%c0_6, %c0_7] : memref<128x128xf32, #tpu.memory_space<vmem>>, vector<128x128xf32>
    %cst_8 = arith.constant dense<0.000000e+00> : vector<8x128xf32>
    %9 = tpu.matmul %7, %8, %cst_8 {dimension_numbers = #tpu.dot_dimension_numbers<[1], [0], [0], [1], [0, 0, 1, 1], [], []>} : vector<8x128xf32>, vector<128x128xf32>, vector<8x128xf32> -> vector<8x128xf32>
    %c0_9 = arith.constant 0 : index
    %c0_10 = arith.constant 0 : index
    %10 = vector.load %arg4[%c0_9, %c0_10] : memref<1x128xf32, #tpu.memory_space<vmem>>, vector<1x128xf32>
    %11 = vector.broadcast %10 : vector<1x128xf32> to vector<8x128xf32>
    %12 = arith.addf %9, %11 : vector<8x128xf32>
    %cst_11 = arith.constant 0.000000e+00 : f32
    %13 = vector.broadcast %cst_11 : f32 to vector<8x128xf32>
    %14 = arith.maximumf %12, %13 : vector<8x128xf32>
    %c0_12 = arith.constant 0 : index
    %c0_13 = arith.constant 0 : index
    %15 = vector.load %arg5[%c0_12, %c0_13] : memref<128x128xf32, #tpu.memory_space<vmem>>, vector<128x128xf32>
    %cst_14 = arith.constant dense<0.000000e+00> : vector<8x128xf32>
    %16 = tpu.matmul %14, %15, %cst_14 {dimension_numbers = #tpu.dot_dimension_numbers<[1], [0], [0], [1], [0, 0, 1, 1], [], []>} : vector<8x128xf32>, vector<128x128xf32>, vector<8x128xf32> -> vector<8x128xf32>
    %c0_15 = arith.constant 0 : index
    %c0_16 = arith.constant 0 : index
    %17 = vector.load %arg6[%c0_15, %c0_16] : memref<1x128xf32, #tpu.memory_space<vmem>>, vector<1x128xf32>
    %18 = vector.broadcast %17 : vector<1x128xf32> to vector<8x128xf32>
    %19 = arith.addf %16, %18 : vector<8x128xf32>
    %c0_17 = arith.constant 0 : index
    %c0_18 = arith.constant 0 : index
    %20 = vector.load %arg7[%c0_17, %c0_18] : memref<8x128xf32, #tpu.memory_space<vmem>>, vector<8x128xf32>
    tpu.vector_store %arg7[%c0_17, %c0_18], %19 {strides = array<i32>} : memref<8x128xf32, #tpu.memory_space<vmem>>, vector<8x128xf32>,
    return
  }
}

</mosaic_0001>

<bundles_post_ra>
// kernel: net_forward.3
= control target key start
LH: loop header
LB: loop body
LE: loop exit
PB: predicated region body
PF: predicated region fallthrough
CT: control target
= control target key end

     0   :  { %s909_s12 = smov 0   ;;  %s1141_s0 = inlined_call_operand.vmem [shape: f32[2,4,200,128], index: 0, kind: input, shape index: {}]   ;;  %s1142_s1 = inlined_call_operand.vmem [shape: f32[128,128], index: 1, kind: input, shape index: {}]   ;;  %s1143_s2 = inlined_call_operand.vmem [shape: f32[1,128], index: 2, kind: input, shape index: {}]   ;;  %s1144_s3 = inlined_call_operand.vmem [shape: f32[2,200,128], index: 3, kind: output, shape index: {}]  }
   0x1 LB: > { %s813_s13 = sadd.s32 4294967295, %s887_s12   ;;  %p817_p0 = scmp.ge.s32.totalorder %s887_s12, 1  ;;  %s887_s12 = sphi %s909_s12, %s13_s12  }
   0x2   : > { %p137_p1 = scmp.lt.s32.totalorder %s887_s12, 3 }
   0x4   : > { %p138_p2 = pnand %p817_p0, %p137_p1 }
   0x5   : > { %p161_p3 = scmp.lt.s32.totalorder (!%p138_p2), %s813_s13, 1 }
   0x6   : > { %141 = sbr.rel (%p138_p2) target bundleno = 376 (0x178), region = 32 }
   0xb   : > { %v286_v0 = vld [vmem:[%s1142_s1 + $0x78] sm:$0xff]  ;;  %v285_v1 = vld [vmem:[%s1142_s1 + $0x70] sm:$0xff]  ;;  %v284_v2 = vld [vmem:[%s1142_s1 + $0x68] sm:$0xff]  ;;  %s1146_s13 = smov (!%p161_p3, %s813_s13), 1 }
   0xc   : > { %823 = vmatpush.msra.mxu2 %v286_v0  ;;  %824 = vmatpush.msra.mxu3 %v286_v0  ;;  %v283_v3 = vld [vmem:[%s1142_s1 + $0x60] sm:$0xff]  ;;  %v282_v4 = vld [vmem:[%s1142_s1 + $0x58] sm:$0xff]  ;;  %v281_v5 = vld [vmem:[%s1142_s1 + $0x50] sm:$0xff]  ;;  %s870_s15 = smul.u32 800, %s1146_s13 }
   0xd   : > { %287 = vmatpush.msra.mxu0 %v286_v0  ;;  %822 = vmatpush.msra.mxu1 %v286_v0  ;;  %v280_v6 = vld [vmem:[%s1142_s1 + $0x48] sm:$0xff]  ;;  %v279_v7 = vld [vmem:[%s1142_s1 + $0x40] sm:$0xff]  ;;  %v278_v8 = vld [vmem:[%s1142_s1 + $0x38] sm:$0xff]  ;;  %s871_s27 = smul.u32 200, %s1146_s13 }
   0xe   : > { %826 = vmatpush.msra.mxu2 %v285_v1  ;;  %827 = vmatpush.msra.mxu3 %v285_v1  ;;  %v277_v9 = vld [vmem:[%s1142_s1 + $0x30] sm:$0xff]  ;;  %v276_v10 = vld [vmem:[%s1142_s1 + $0x28] sm:$0xff]  ;;  %v275_v11 = vld [vmem:[%s1142_s1 + $0x20] sm:$0xff]  ;;  %s972_s22 = scalar_lea.vmem %s1141_s0, %s870_s15 }
   0xf   : > { %288 = vmatpush.msra.mxu0 %v285_v1  ;;  %825 = vmatpush.msra.mxu1 %v285_v1  ;;  %v274_v12 = vld [vmem:[%s1142_s1 + $0x18] sm:$0xff]  ;;  %v273_v13 = vld [vmem:[%s1142_s1 + $0x10] sm:$0xff]  ;;  %v272_v14 = vld [vmem:[%s1142_s1 + $0x8] sm:$0xff]  ;;  %s1059_s30 = scalar_lea.vmem %s1144_s3, %s871_s27 }
  0x10   : > { %829 = vmatpush.msra.mxu2 %v284_v2  ;;  %830 = vmatpush.msra.mxu3 %v284_v2  ;;  %v271_v15 = vld [vmem:[%s1142_s1] sm:$0xff]  ;;  %v221_v16 = vld [vmem:[%s972_s22 + $0x190] sm:$0xff]  ;;  %v246_v17 = vld [vmem:[%s972_s22 + $0x258] sm:$0xff] }
  0x11   : > { %289 = vmatpush.msra.mxu0 %v284_v2  ;;  %828 = vmatpush.msra.mxu1 %v284_v2  ;;  %v171_v18 = vld [vmem:[%s972_s22] sm:$0xff]  ;;  %v196_v19 = vld [vmem:[%s972_s22 + $0xc8] sm:$0xff]  ;;  %v222_v20 = vld [vmem:[%s972_s22 + $0x198] sm:$0xff] }
  0x12   : > { %832 = vmatpush.msra.mxu2 %v283_v3  ;;  %833 = vmatpush.msra.mxu3 %v283_v3  ;;  %v247_v21 = vld [vmem:[%s972_s22 + $0x260] sm:$0xff]  ;;  %v172_v22 = vld [vmem:[%s972_s22 + $0x8] sm:$0xff]  ;;  %v197_v23 = vld [vmem:[%s972_s22 + $0xd0] sm:$0xff] }
  0x13   : > { %290 = vmatpush.msra.mxu0 %v283_v3  ;;  %831 = vmatpush.msra.mxu1 %v283_v3  ;;  %v223_v24 = vld [vmem:[%s972_s22 + $0x1a0] sm:$0xff]  ;;  %v248_v25 = vld [vmem:[%s972_s22 + $0x268] sm:$0xff]  ;;  %v173_v26 = vld [vmem:[%s972_s22 + $0x10] sm:$0xff] }
  0x14   : > { %835 = vmatpush.msra.mxu2 %v282_v4  ;;  %836 = vmatpush.msra.mxu3 %v282_v4  ;;  %v198_v27 = vld [vmem:[%s972_s22 + $0xd8] sm:$0xff]  ;;  %v224_v28 = vld [vmem:[%s972_s22 + $0x1a8] sm:$0xff]  ;;  %v249_v29 = vld [vmem:[%s972_s22 + $0x270] sm:$0xff] }
  0x15   : > { %291 = vmatpush.msra.mxu0 %v282_v4  ;;  %834 = vmatpush.msra.mxu1 %v282_v4  ;;  %v174_v30 = vld [vmem:[%s972_s22 + $0x18] sm:$0xff]  ;;  %v199_v31 = vld [vmem:[%s972_s22 + $0xe0] sm:$0xff]  ;;  %v225_v32 = vld [vmem:[%s972_s22 + $0x1b0] sm:$0xff] }
  0x16   : > { %838 = vmatpush.msra.mxu2 %v281_v5  ;;  %839 = vmatpush.msra.mxu3 %v281_v5  ;;  %v250_v33 = vld [vmem:[%s972_s22 + $0x278] sm:$0xff]  ;;  %v175_v34 = vld [vmem:[%s972_s22 + $0x20] sm:$0xff]  ;;  %v200_v35 = vld [vmem:[%s972_s22 + $0xe8] sm:$0xff] }
  0x17   : > { %292 = vmatpush.msra.mxu0 %v281_v5  ;;  %837 = vmatpush.msra.mxu1 %v281_v5  ;;  %v226_v36 = vld [vmem:[%s972_s22 + $0x1b8] sm:$0xff]  ;;  %v251_v37 = vld [vmem:[%s972_s22 + $0x280] sm:$0xff]  ;;  %v176_v38 = vld [vmem:[%s972_s22 + $0x28] sm:$0xff] }
  0x18   : > { %841 = vmatpush.msra.mxu2 %v280_v6  ;;  %842 = vmatpush.msra.mxu3 %v280_v6  ;;  %v201_v39 = vld [vmem:[%s972_s22 + $0xf0] sm:$0xff]  ;;  %v227_v40 = vld [vmem:[%s972_s22 + $0x1c0] sm:$0xff]  ;;  %v252_v41 = vld [vmem:[%s972_s22 + $0x288] sm:$0xff] }
  0x19   : > { %293 = vmatpush.msra.mxu0 %v280_v6  ;;  %840 = vmatpush.msra.mxu1 %v280_v6  ;;  %v177_v42 = vld [vmem:[%s972_s22 + $0x30] sm:$0xff]  ;;  %v202_v43 = vld [vmem:[%s972_s22 + $0xf8] sm:$0xff]  ;;  %v228_v44 = vld [vmem:[%s972_s22 + $0x1c8] sm:$0xff] }
  0x1a   : > { %844 = vmatpush.msra.mxu2 %v279_v7  ;;  %845 = vmatpush.msra.mxu3 %v279_v7  ;;  %v253_v45 = vld [vmem:[%s972_s22 + $0x290] sm:$0xff]  ;;  %v178_v46 = vld [vmem:[%s972_s22 + $0x38] sm:$0xff]  ;;  %v203_v47 = vld [vmem:[%s972_s22 + $0x100] sm:$0xff] }
  0x1b   : > { %294 = vmatpush.msra.mxu0 %v279_v7  ;;  %843 = vmatpush.msra.mxu1 %v279_v7  ;;  %v229_v48 = vld [vmem:[%s972_s22 + $0x1d0] sm:$0xff]  ;;  %v254_v49 = vld [vmem:[%s972_s22 + $0x298] sm:$0xff]  ;;  %v179_v50 = vld [vmem:[%s972_s22 + $0x40] sm:$0xff] }
  0x1c   : > { %847 = vmatpush.msra.mxu2 %v278_v8  ;;  %848 = vmatpush.msra.mxu3 %v278_v8  ;;  %v204_v51 = vld [vmem:[%s972_s22 + $0x108] sm:$0xff]  ;;  %v230_v52 = vld [vmem:[%s972_s22 + $0x1d8] sm:$0xff]  ;;  %v255_v53 = vld [vmem:[%s972_s22 + $0x2a0] sm:$0xff] }
  0x1d   : > { %295 = vmatpush.msra.mxu0 %v278_v8  ;;  %846 = vmatpush.msra.mxu1 %v278_v8  ;;  %v180_v54 = vld [vmem:[%s972_s22 + $0x48] sm:$0xff]  ;;  %v205_v55 = vld [vmem:[%s972_s22 + $0x110] sm:$0xff]  ;;  %v231_v56 = vld [vmem:[%s972_s22 + $0x1e0] sm:$0xff] }
  0x1e   : > { %850 = vmatpush.msra.mxu2 %v277_v9  ;;  %851 = vmatpush.msra.mxu3 %v277_v9  ;;  %v256_v57 = vld [vmem:[%s972_s22 + $0x2a8] sm:$0xff]  ;;  %v181_v58 = vld [vmem:[%s972_s22 + $0x50] sm:$0xff]  ;;  %v206_v59 = vld [vmem:[%s972_s22 + $0x118] sm:$0xff] }
  0x1f   : > { %296 = vmatpush.msra.mxu0 %v277_v9  ;;  %849 = vmatpush.msra.mxu1 %v277_v9  ;;  %v232_v60 = vld [vmem:[%s972_s22 + $0x1e8] sm:$0xff]  ;;  %v257_v61 = vld [vmem:[%s972_s22 + $0x2b0] sm:$0xff]  ;;  %v182_v62 = vld [vmem:[%s972_s22 + $0x58] sm:$0xff] }
  0x20   : > { %853 = vmatpush.msra.mxu2 %v276_v10  ;;  %854 = vmatpush.msra.mxu3 %v276_v10  ;;  %v207_v63 = vld [vmem:[%s972_s22 + $0x120] sm:$0xff]  ;;  %v233_v0 = vld [vmem:[%s972_s22 + $0x1f0] sm:$0xff]  ;;  %v258_v1 = vld [vmem:[%s972_s22 + $0x2b8] sm:$0xff] }
  0x21   : > { %297 = vmatpush.msra.mxu0 %v276_v10  ;;  %852 = vmatpush.msra.mxu1 %v276_v10  ;;  %v183_v2 = vld [vmem:[%s972_s22 + $0x60] sm:$0xff]  ;;  %v208_v3 = vld [vmem:[%s972_s22 + $0x128] sm:$0xff]  ;;  %v234_v4 = vld [vmem:[%s972_s22 + $0x1f8] sm:$0xff] }
  0x22   : > { %856 = vmatpush.msra.mxu2 %v275_v11  ;;  %857 = vmatpush.msra.mxu3 %v275_v11  ;;  %v259_v5 = vld [vmem:[%s972_s22 + $0x2c0] sm:$0xff]  ;;  %v184_v6 = vld [vmem:[%s972_s22 + $0x68] sm:$0xff]  ;;  %v209_v7 = vld [vmem:[%s972_s22 + $0x130] sm:$0xff] }
  0x23   : > { %298 = vmatpush.msra.mxu0 %v275_v11  ;;  %855 = vmatpush.msra.mxu1 %v275_v11  ;;  %v235_v8 = vld [vmem:[%s972_s22 + $0x200] sm:$0xff]  ;;  %v260_v9 = vld [vmem:[%s972_s22 + $0x2c8] sm:$0xff]  ;;  %v185_v10 = vld [vmem:[%s972_s22 + $0x70] sm:$0xff] }
  0x24   : > { %859 = vmatpush.msra.mxu2 %v274_v12  ;;  %860 = vmatpush.msra.mxu3 %v274_v12  ;;  %v210_v11 = vld [vmem:[%s972_s22 + $0x138] sm:$0xff] }
  0x25   : > { %299 = vmatpush.msra.mxu0 %v274_v12  ;;  %858 = vmatpush.msra.mxu1 %v274_v12  ;;  %v236_v12 = vld [vmem:[%s972_s22 + $0x208] sm:$0xff] }
  0x26   : > { %862 = vmatpush.msra.mxu2 %v273_v13  ;;  %863 = vmatpush.msra.mxu3 %v273_v13 }
  0x27   : > { %300 = vmatpush.msra.mxu0 %v273_v13  ;;  %861 = vmatpush.msra.mxu1 %v273_v13  ;;  %v261_v13 = vld [vmem:[%s972_s22 + $0x2d0] sm:$0xff] }
  0x28   : > { %865 = vmatpush.msra.mxu2 %v272_v14  ;;  %866 = vmatpush.msra.mxu3 %v272_v14 }
  0x29   : > { %301 = vmatpush.msra.mxu0 %v272_v14  ;;  %864 = vmatpush.msra.mxu1 %v272_v14  ;;  %v186_v14 = vld [vmem:[%s972_s22 + $0x78] sm:$0xff] }
  0x2a   : > { %868 = vmatpush.msra.mxu2 %v271_v15  ;;  %869 = vmatpush.msra.mxu3 %v271_v15 }
  0x2b   : > { %453 = vmatmul.f32.vlgmr.msra.gmra.mxu2 %v221_v16  ;;  %528 = vmatmul.f32.vlgmr.msra.gmra.mxu3 %v246_v17  ;;  %v237_v16 = vld [vmem:[%s972_s22 + $0x210] sm:$0xff]  ;;  %v262_v17 = vld [vmem:[%s972_s22 + $0x2d8] sm:$0xff] }
  0x2c   : > { %302 = vmatpush.msra.mxu0 %v271_v15  ;;  %867 = vmatpush.msra.mxu1 %v271_v15  ;;  %v211_v15 = vld [vmem:[%s972_s22 + $0x140] sm:$0xff] }
  0x2d   : > { %303 = vmatmul.f32.vlgmr.msra.gmra.mxu0 %v171_v18  ;;  %378 = vmatmul.f32.vlgmr.msra.gmra.mxu1 %v196_v19 }
  0x33   : > { %456 = vmatmul.f32.gmra.mxu2 %v222_v20  ;;  %531 = vmatmul.f32.gmra.mxu3 %v247_v21  ;;  %v187_v20 = vld [vmem:[%s972_s22 + $0x80] sm:$0xff]  ;;  %v212_v21 = vld [vmem:[%s972_s22 + $0x148] sm:$0xff] }
  0x35   : > { %306 = vmatmul.f32.gmra.mxu0 %v172_v22  ;;  %381 = vmatmul.f32.gmra.mxu1 %v197_v23 }
  0x3b   : > { %459 = vmatmul.f32.gmra.mxu2 %v223_v24  ;;  %534 = vmatmul.f32.gmra.mxu3 %v248_v25 }
  0x3d   : > { %309 = vmatmul.f32.gmra.mxu0 %v173_v26  ;;  %384 = vmatmul.f32.gmra.mxu1 %v198_v27  ;;  %v1048_v26 = vld [vmem:[%s1143_s2] ss:$0 sm:$0xff]  ;;  %v238_v27 = vld [vmem:[%s972_s22 + $0x218] sm:$0xff] }
  0x43   : > { %462 = vmatmul.f32.gmra.mxu2 %v224_v28  ;;  %537 = vmatmul.f32.gmra.mxu3 %v249_v29  ;;  %v263_v28 = vld [vmem:[%s972_s22 + $0x2e0] sm:$0xff] }
  0x45   : > { %312 = vmatmul.f32.gmra.mxu0 %v174_v30  ;;  %387 = vmatmul.f32.gmra.mxu1 %v199_v31 }
  0x4b   : > { %465 = vmatmul.f32.gmra.mxu2 %v225_v32  ;;  %540 = vmatmul.f32.gmra.mxu3 %v250_v33  ;;  %v188_v32 = vld [vmem:[%s972_s22 + $0x88] sm:$0xff]  ;;  %v213_v33 = vld [vmem:[%s972_s22 + $0x150] sm:$0xff] }
  0x4d   : > { %315 = vmatmul.f32.gmra.mxu0 %v175_v34  ;;  %390 = vmatmul.f32.gmra.mxu1 %v200_v35 }
  0x53   : > { %468 = vmatmul.f32.gmra.mxu2 %v226_v36  ;;  %543 = vmatmul.f32.gmra.mxu3 %v251_v37 }
  0x55   : > { %318 = vmatmul.f32.gmra.mxu0 %v176_v38  ;;  %393 = vmatmul.f32.gmra.mxu1 %v201_v39 }
  0x5b   : > { %471 = vmatmul.f32.gmra.mxu2 %v227_v40  ;;  %546 = vmatmul.f32.gmra.mxu3 %v252_v41  ;;  %v239_v40 = vld [vmem:[%s972_s22 + $0x220] sm:$0xff]  ;;  %v264_v41 = vld [vmem:[%s972_s22 + $0x2e8] sm:$0xff] }
  0x5d   : > { %321 = vmatmul.f32.gmra.mxu0 %v177_v42  ;;  %396 = vmatmul.f32.gmra.mxu1 %v202_v43 }
  0x63   : > { %474 = vmatmul.f32.gmra.mxu2 %v228_v44  ;;  %549 = vmatmul.f32.gmra.mxu3 %v253_v45  ;;  %v189_v45 = vld [vmem:[%s972_s22 + $0x90] sm:$0xff] }
  0x65   : > { %324 = vmatmul.f32.gmra.mxu0 %v178_v46  ;;  %399 = vmatmul.f32.gmra.mxu1 %v203_v47  ;;  %v214_v46 = vld [vmem:[%s972_s22 + $0x158] sm:$0xff] }
  0x6b   : > { %477 = vmatmul.f32.gmra.mxu2 %v229_v48  ;;  %552 = vmatmul.f32.gmra.mxu3 %v254_v49 }
  0x6d   : > { %327 = vmatmul.f32.gmra.mxu0 %v179_v50  ;;  %402 = vmatmul.f32.gmra.mxu1 %v204_v51 }
  0x73   : > { %480 = vmatmul.f32.gmra.mxu2 %v230_v52  ;;  %555 = vmatmul.f32.gmra.mxu3 %v255_v53  ;;  %v240_v53 = vld [vmem:[%s972_s22 + $0x228] sm:$0xff] }
  0x75   : > { %330 = vmatmul.f32.gmra.mxu0 %v180_v54  ;;  %405 = vmatmul.f32.gmra.mxu1 %v205_v55  ;;  %v265_v54 = vld [vmem:[%s972_s22 + $0x2f0] sm:$0xff] }
  0x7b   : > { %483 = vmatmul.f32.gmra.mxu2 %v231_v56  ;;  %558 = vmatmul.f32.gmra.mxu3 %v256_v57 }
  0x7d   : > { %333 = vmatmul.f32.gmra.mxu0 %v181_v58  ;;  %408 = vmatmul.f32.gmra.mxu1 %v206_v59  ;;  %v190_v58 = vld [vmem:[%s972_s22 + $0x98] sm:$0xff]  ;;  %v215_v59 = vld [vmem:[%s972_s22 + $0x160] sm:$0xff] }
  0x83   : > { %486 = vmatmul.f32.gmra.mxu2 %v232_v60  ;;  %561 = vmatmul.f32.gmra.mxu3 %v257_v61 }
  0x85   : > { %336 = vmatmul.f32.gmra.mxu0 %v182_v62  ;;  %411 = vmatmul.f32.gmra.mxu1 %v207_v63 }
  0x8b   : > { %489 = vmatmul.f32.gmra.mxu2 %v233_v0  ;;  %564 = vmatmul.f32.gmra.mxu3 %v258_v1 }
  0x8d   : > { %339 = vmatmul.f32.gmra.mxu0 %v183_v2  ;;  %414 = vmatmul.f32.gmra.mxu1 %v208_v3  ;;  %v241_v2 = vld [vmem:[%s972_s22 + $0x230] sm:$0xff]  ;;  %v266_v3 = vld [vmem:[%s972_s22 + $0x2f8] sm:$0xff] }
  0x93   : > { %492 = vmatmul.f32.gmra.mxu2 %v234_v4  ;;  %567 = vmatmul.f32.gmra.mxu3 %v259_v5 }
  0x95   : > { %342 = vmatmul.f32.gmra.mxu0 %v184_v6  ;;  %417 = vmatmul.f32.gmra.mxu1 %v209_v7  ;;  %v191_v7 = vld [vmem:[%s972_s22 + $0xa0] sm:$0xff] }
  0x9b   : > { %495 = vmatmul.f32.gmra.mxu2 %v235_v8  ;;  %570 = vmatmul.f32.gmra.mxu3 %v260_v9  ;;  %v216_v8 = vld [vmem:[%s972_s22 + $0x168] sm:$0xff] }
  0x9d   : > { %345 = vmatmul.f32.gmra.mxu0 %v185_v10  ;;  %420 = vmatmul.f32.gmra.mxu1 %v210_v11 }
  0xa3   : > { %498 = vmatmul.f32.gmra.mxu2 %v236_v12  ;;  %573 = vmatmul.f32.gmra.mxu3 %v261_v13 }
  0xa5   : > { %348 = vmatmul.f32.gmra.mxu0 %v186_v14  ;;  %423 = vmatmul.f32.gmra.mxu1 %v211_v15  ;;  %v242_v15 = vld [vmem:[%s972_s22 + $0x238] sm:$0xff] }
  0xaa   : > { %v304_v18 = vpop.f32.mrf.mxu0  ;;  %v379_v19 = vpop.f32.mrf.mxu1 }
  0xab   : > { %501 = vmatmul.f32.gmra.mxu2 %v237_v16  ;;  %576 = vmatmul.f32.gmra.mxu3 %v262_v17  ;;  %v604_v22 = vmax.f32 %v304_v18, %v379_v19  ;;  %v267_v16 = vld [vmem:[%s972_s22 + $0x300] sm:$0xff] }
  0xad   : > { %351 = vmatmul.f32.gmra.mxu0 %v187_v20  ;;  %426 = vmatmul.f32.gmra.mxu1 %v212_v21  ;;  %v192_v20 = vld [vmem:[%s972_s22 + $0xa8] sm:$0xff]  ;;  %v217_v21 = vld [vmem:[%s972_s22 + $0x170] sm:$0xff] }
  0xae   : > { %v454_v23 = vpop.f32.mrf.mxu2  ;;  %v529_v24 = vpop.f32.mrf.mxu3 }
  0xaf   : > { %v629_v25 = vmax.f32 %v454_v23, %v529_v24 }
  0xb1   : > { %v654_v29 = vmax.f32 %v604_v22, %v629_v25 }
  0xb2   : > { %v307_v30 = vpop.f32.mrf.mxu0  ;;  %v382_v31 = vpop.f32.mrf.mxu1 }
  0xb3   : > { %v683_v34 = vadd.f32 %v1048_v26, %v654_v29  ;;  %504 = vmatmul.f32.gmra.mxu2 %v238_v27  ;;  %579 = vmatmul.f32.gmra.mxu3 %v263_v28  ;;  %v605_v36 = vmax.f32 %v307_v30, %v382_v31  ;;  %v243_v29 = vld [vmem:[%s972_s22 + $0x240] sm:$0xff]  ;;  %v268_v30 = vld [vmem:[%s972_s22 + $0x308] sm:$0xff] }
  0xb5   : > { %v708_v35 = vmax.f32 %v683_v34, 0.0  ;;  %354 = vmatmul.f32.gmra.mxu0 %v188_v32  ;;  %429 = vmatmul.f32.gmra.mxu1 %v213_v33  ;;  %v193_v34 = vld [vmem:[%s972_s22 + $0xb0] sm:$0xff] }
  0xb6   : > { %v457_v37 = vpop.f32.mrf.mxu2  ;;  %v532_v38 = vpop.f32.mrf.mxu3 }
  0xb7   : > { %733 = vst [vmem:[%s1059_s30] sm:$0xff] %v708_v35  ;;  %v630_v39 = vmax.f32 %v457_v37, %v532_v38  ;;  %v218_v35 = vld [vmem:[%s972_s22 + $0x178] sm:$0xff] }
  0xb9   : > { %v655_v42 = vmax.f32 %v605_v36, %v630_v39 }
  0xba   : > { %v310_v43 = vpop.f32.mrf.mxu0  ;;  %v385_v44 = vpop.f32.mrf.mxu1 }
  0xbb   : > { %v684_v47 = vadd.f32 %v1048_v26, %v655_v42  ;;  %507 = vmatmul.f32.gmra.mxu2 %v239_v40  ;;  %582 = vmatmul.f32.gmra.mxu3 %v264_v41  ;;  %v606_v49 = vmax.f32 %v310_v43, %v385_v44  ;;  %v244_v42 = vld [vmem:[%s972_s22 + $0x248] sm:$0xff]  ;;  %v269_v43 = vld [vmem:[%s972_s22 + $0x310] sm:$0xff] }
  0xbd   : > { %v709_v48 = vmax.f32 %v684_v47, 0.0  ;;  %357 = vmatmul.f32.gmra.mxu0 %v189_v45  ;;  %432 = vmatmul.f32.gmra.mxu1 %v214_v46  ;;  %v194_v47 = vld [vmem:[%s972_s22 + $0xb8] sm:$0xff] }
  0xbe   : > { %v460_v50 = vpop.f32.mrf.mxu2  ;;  %v535_v51 = vpop.f32.mrf.mxu3 }
  0xbf   : > { %734 = vst [vmem:[%s1059_s30 + $0x8] sm:$0xff] %v709_v48  ;;  %v631_v52 = vmax.f32 %v460_v50, %v535_v51  ;;  %v219_v48 = vld [vmem:[%s972_s22 + $0x180] sm:$0xff] }
  0xc1   : > { %v656_v55 = vmax.f32 %v606_v49, %v631_v52 }
  0xc2   : > { %v313_v56 = vpop.f32.mrf.mxu0  ;;  %v388_v57 = vpop.f32.mrf.mxu1 }
  0xc3   : > { %v685_v60 = vadd.f32 %v1048_v26, %v656_v55  ;;  %510 = vmatmul.f32.gmra.mxu2 %v240_v53  ;;  %585 = vmatmul.f32.gmra.mxu3 %v265_v54  ;;  %v607_v62 = vmax.f32 %v313_v56, %v388_v57  ;;  %v245_v55 = vld [vmem:[%s972_s22 + $0x250] sm:$0xff]  ;;  %v270_v56 = vld [vmem:[%s972_s22 + $0x318] sm:$0xff] }
  0xc5   : > { %v710_v61 = vmax.f32 %v685_v60, 0.0  ;;  %360 = vmatmul.f32.gmra.mxu0 %v190_v58  ;;  %435 = vmatmul.f32.gmra.mxu1 %v215_v59  ;;  %v195_v60 = vld [vmem:[%s972_s22 + $0xc0] sm:$0xff] }
  0xc6   : > { %v463_v63 = vpop.f32.mrf.mxu2  ;;  %v538_v0 = vpop.f32.mrf.mxu3 }
  0xc7   : > { %735 = vst [vmem:[%s1059_s30 + $0x10] sm:$0xff] %v710_v61  ;;  %v632_v1 = vmax.f32 %v463_v63, %v538_v0  ;;  %v220_v61 = vld [vmem:[%s972_s22 + $0x188] sm:$0xff] }
  0xc9   : > { %v657_v4 = vmax.f32 %v607_v62, %v632_v1 }
  0xca   : > { %v316_v5 = vpop.f32.mrf.mxu0  ;;  %v391_v6 = vpop.f32.mrf.mxu1 }
  0xcb   : > { %v686_v9 = vadd.f32 %v1048_v26, %v657_v4  ;;  %513 = vmatmul.f32.gmra.mxu2 %v241_v2  ;;  %588 = vmatmul.f32.gmra.mxu3 %v266_v3  ;;  %v608_v11 = vmax.f32 %v316_v5, %v391_v6 }
  0xcd   : > { %v711_v10 = vmax.f32 %v686_v9, 0.0  ;;  %363 = vmatmul.f32.gmra.mxu0 %v191_v7  ;;  %438 = vmatmul.f32.gmra.mxu1 %v216_v8 }
  0xce   : > { %v466_v12 = vpop.f32.mrf.mxu2  ;;  %v541_v13 = vpop.f32.mrf.mxu3 }
  0xcf   : > { %736 = vst [vmem:[%s1059_s30 + $0x18] sm:$0xff] %v711_v10  ;;  %v633_v14 = vmax.f32 %v466_v12, %v541_v13 }
  0xd1   : > { %v658_v17 = vmax.f32 %v608_v11, %v633_v14 }
  0xd2   : > { %v319_v18 = vpop.f32.mrf.mxu0  ;;  %v394_v19 = vpop.f32.mrf.mxu1 }
  0xd3   : > { %v687_v22 = vadd.f32 %v1048_v26, %v658_v17  ;;  %516 = vmatmul.f32.gmra.mxu2 %v242_v15  ;;  %591 = vmatmul.f32.gmra.mxu3 %v267_v16  ;;  %v609_v24 = vmax.f32 %v319_v18, %v394_v19 }
  0xd5   : > { %v712_v23 = vmax.f32 %v687_v22, 0.0  ;;  %366 = vmatmul.f32.gmra.mxu0 %v192_v20  ;;  %441 = vmatmul.f32.gmra.mxu1 %v217_v21 }
  0xd6   : > { %v469_v25 = vpop.f32.mrf.mxu2  ;;  %v544_v27 = vpop.f32.mrf.mxu3 }
  0xd7   : > { %737 = vst [vmem:[%s1059_s30 + $0x20] sm:$0xff] %v712_v23  ;;  %v634_v28 = vmax.f32 %v469_v25, %v544_v27 }
  0xd9   : > { %v659_v31 = vmax.f32 %v609_v24, %v634_v28 }
  0xda   : > { %v322_v32 = vpop.f32.mrf.mxu0  ;;  %v397_v33 = vpop.f32.mrf.mxu1 }
  0xdb   : > { %v688_v36 = vadd.f32 %v1048_v26, %v659_v31  ;;  %519 = vmatmul.f32.gmra.mxu2 %v243_v29  ;;  %594 = vmatmul.f32.gmra.mxu3 %v268_v30  ;;  %v610_v38 = vmax.f32 %v322_v32, %v397_v33 }
  0xdd   : > { %v713_v37 = vmax.f32 %v688_v36, 0.0  ;;  %369 = vmatmul.f32.gmra.mxu0 %v193_v34  ;;  %444 = vmatmul.f32.gmra.mxu1 %v218_v35 }
  0xde   : > { %v472_v39 = vpop.f32.mrf.mxu2  ;;  %v547_v40 = vpop.f32.mrf.mxu3 }
  0xdf   : > { %738 = vst [vmem:[%s1059_s30 + $0x28] sm:$0xff] %v713_v37  ;;  %v635_v41 = vmax.f32 %v472_v39, %v547_v40 }
  0xe1   : > { %v660_v44 = vmax.f32 %v610_v38, %v635_v41 }
  0xe2   : > { %v325_v45 = vpop.f32.mrf.mxu0  ;;  %v400_v46 = vpop.f32.mrf.mxu1 }
  0xe3   : > { %v689_v49 = vadd.f32 %v1048_v26, %v660_v44  ;;  %522 = vmatmul.f32.gmra.mxu2 %v244_v42  ;;  %597 = vmatmul.f32.gmra.mxu3 %v269_v43  ;;  %v611_v51 = vmax.f32 %v325_v45, %v400_v46 }
  0xe5   : > { %v714_v50 = vmax.f32 %v689_v49, 0.0  ;;  %372 = vmatmul.f32.gmra.mxu0 %v194_v47  ;;  %447 = vmatmul.f32.gmra.mxu1 %v219_v48 }
  0xe6   : > { %v475_v52 = vpop.f32.mrf.mxu2  ;;  %v550_v53 = vpop.f32.mrf.mxu3 }
  0xe7   : > { %739 = vst [vmem:[%s1059_s30 + $0x30] sm:$0xff] %v714_v50  ;;  %v636_v54 = vmax.f32 %v475_v52, %v550_v53 }
  0xe9   : > { %v661_v57 = vmax.f32 %v611_v51, %v636_v54 }
  0xea   : > { %v328_v58 = vpop.f32.mrf.mxu0  ;;  %v403_v59 = vpop.f32.mrf.mxu1 }
  0xeb   : > { %v690_v62 = vadd.f32 %v1048_v26, %v661_v57  ;;  %525 = vmatmul.f32.gmra.mxu2 %v245_v55  ;;  %600 = vmatmul.f32.gmra.mxu3 %v270_v56  ;;  %v612_v0 = vmax.f32 %v328_v58, %v403_v59 }
  0xed   : > { %v715_v63 = vmax.f32 %v690_v62, 0.0  ;;  %375 = vmatmul.f32.gmra.mxu0 %v195_v60  ;;  %450 = vmatmul.f32.gmra.mxu1 %v220_v61 }
  0xee   : > { %v478_v1 = vpop.f32.mrf.mxu2  ;;  %v553_v2 = vpop.f32.mrf.mxu3 }
  0xef   : > { %740 = vst [vmem:[%s1059_s30 + $0x38] sm:$0xff] %v715_v63  ;;  %v637_v3 = vmax.f32 %v478_v1, %v553_v2 }
  0xf1   : > { %v662_v4 = vmax.f32 %v612_v0, %v637_v3 }
  0xf2   : > { %v331_v5 = vpop.f32.mrf.mxu0  ;;  %v406_v6 = vpop.f32.mrf.mxu1 }
  0xf3   : > { %v691_v7 = vadd.f32 %v1048_v26, %v662_v4  ;;  %v613_v9 = vmax.f32 %v331_v5, %v406_v6 }
  0xf5   : > { %v716_v8 = vmax.f32 %v691_v7, 0.0 }
  0xf6   : > { %v481_v10 = vpop.f32.mrf.mxu2  ;;  %v556_v11 = vpop.f32.mrf.mxu3 }
  0xf7   : > { %741 = vst [vmem:[%s1059_s30 + $0x40] sm:$0xff] %v716_v8  ;;  %v638_v12 = vmax.f32 %v481_v10, %v556_v11 }
  0xf9   : > { %v663_v13 = vmax.f32 %v613_v9, %v638_v12 }
  0xfa   : > { %v334_v14 = vpop.f32.mrf.mxu0  ;;  %v409_v15 = vpop.f32.mrf.mxu1 }
  0xfb   : > { %v692_v16 = vadd.f32 %v1048_v26, %v663_v13  ;;  %v614_v18 = vmax.f32 %v334_v14, %v409_v15 }
  0xfd   : > { %v717_v17 = vmax.f32 %v692_v16, 0.0 }
  0xfe   : > { %v484_v19 = vpop.f32.mrf.mxu2  ;;  %v559_v20 = vpop.f32.mrf.mxu3 }
  0xff   : > { %742 = vst [vmem:[%s1059_s30 + $0x48] sm:$0xff] %v717_v17  ;;  %v639_v21 = vmax.f32 %v484_v19, %v559_v20 }
 0x101   : > { %v664_v22 = vmax.f32 %v614_v18, %v639_v21 }
 0x102   : > { %v337_v23 = vpop.f32.mrf.mxu0  ;;  %v412_v24 = vpop.f32.mrf.mxu1 }
 0x103   : > { %v693_v25 = vadd.f32 %v1048_v26, %v664_v22  ;;  %v615_v28 = vmax.f32 %v337_v23, %v412_v24 }
 0x105   : > { %v718_v27 = vmax.f32 %v693_v25, 0.0 }
 0x106   : > { %v487_v29 = vpop.f32.mrf.mxu2  ;;  %v562_v30 = vpop.f32.mrf.mxu3 }
 0x107   : > { %743 = vst [vmem:[%s1059_s30 + $0x50] sm:$0xff] %v718_v27  ;;  %v640_v31 = vmax.f32 %v487_v29, %v562_v30 }
 0x109   : > { %v665_v32 = vmax.f32 %v615_v28, %v640_v31 }
 0x10a   : > { %v340_v33 = vpop.f32.mrf.mxu0  ;;  %v415_v34 = vpop.f32.mrf.mxu1 }
 0x10b   : > { %v694_v35 = vadd.f32 %v1048_v26, %v665_v32  ;;  %v616_v37 = vmax.f32 %v340_v33, %v415_v34 }
 0x10d   : > { %v719_v36 = vmax.f32 %v694_v35, 0.0 }
 0x10e   : > { %v490_v38 = vpop.f32.mrf.mxu2  ;;  %v565_v39 = vpop.f32.mrf.mxu3 }
 0x10f   : > { %744 = vst [vmem:[%s1059_s30 + $0x58] sm:$0xff] %v719_v36  ;;  %v641_v40 = vmax.f32 %v490_v38, %v565_v39 }
 0x111   : > { %v666_v41 = vmax.f32 %v616_v37, %v641_v40 }
 0x112   : > { %v343_v42 = vpop.f32.mrf.mxu0  ;;  %v418_v43 = vpop.f32.mrf.mxu1 }
 0x113   : > { %v695_v44 = vadd.f32 %v1048_v26, %v666_v41  ;;  %v617_v46 = vmax.f32 %v343_v42, %v418_v43 }
 0x115   : > { %v720_v45 = vmax.f32 %v695_v44, 0.0 }
 0x116   : > { %v493_v47 = vpop.f32.mrf.mxu2  ;;  %v568_v48 = vpop.f32.mrf.mxu3 }
 0x117   : > { %745 = vst [vmem:[%s1059_s30 + $0x60] sm:$0xff] %v720_v45  ;;  %v642_v49 = vmax.f32 %v493_v47, %v568_v48 }
 0x119   : > { %v667_v50 = vmax.f32 %v617_v46, %v642_v49 }
 0x11a   : > { %v346_v51 = vpop.f32.mrf.mxu0  ;;  %v421_v52 = vpop.f32.mrf.mxu1 }
 0x11b   : > { %v696_v53 = vadd.f32 %v1048_v26, %v667_v50  ;;  %v618_v55 = vmax.f32 %v346_v51, %v421_v52 }
 0x11d   : > { %v721_v54 = vmax.f32 %v696_v53, 0.0 }
 0x11e   : > { %v496_v56 = vpop.f32.mrf.mxu2  ;;  %v571_v57 = vpop.f32.mrf.mxu3 }
 0x11f   : > { %746 = vst [vmem:[%s1059_s30 + $0x68] sm:$0xff] %v721_v54  ;;  %v643_v58 = vmax.f32 %v496_v56, %v571_v57 }
 0x121   : > { %v668_v59 = vmax.f32 %v618_v55, %v643_v58 }
 0x122   : > { %v349_v60 = vpop.f32.mrf.mxu0  ;;  %v424_v61 = vpop.f32.mrf.mxu1 }
 0x123   : > { %v697_v62 = vadd.f32 %v1048_v26, %v668_v59  ;;  %v619_v0 = vmax.f32 %v349_v60, %v424_v61 }
 0x125   : > { %v722_v63 = vmax.f32 %v697_v62, 0.0 }
 0x126   : > { %v499_v1 = vpop.f32.mrf.mxu2  ;;  %v574_v2 = vpop.f32.mrf.mxu3 }
 0x127   : > { %747 = vst [vmem:[%s1059_s30 + $0x70] sm:$0xff] %v722_v63  ;;  %v644_v3 = vmax.f32 %v499_v1, %v574_v2 }
 0x129   : > { %v669_v4 = vmax.f32 %v619_v0, %v644_v3 }
 0x12a   : > { %v352_v5 = vpop.f32.mrf.mxu0  ;;  %v427_v6 = vpop.f32.mrf.mxu1 }
 0x12b   : > { %v698_v7 = vadd.f32 %v1048_v26, %v669_v4  ;;  %v620_v9 = vmax.f32 %v352_v5, %v427_v6 }
 0x12d   : > { %v723_v8 = vmax.f32 %v698_v7, 0.0 }
 0x12e   : > { %v502_v10 = vpop.f32.mrf.mxu2  ;;  %v577_v11 = vpop.f32.mrf.mxu3 }
 0x12f   : > { %748 = vst [vmem:[%s1059_s30 + $0x78] sm:$0xff] %v723_v8  ;;  %v645_v12 = vmax.f32 %v502_v10, %v577_v11 }
 0x131   : > { %v670_v13 = vmax.f32 %v620_v9, %v645_v12 }
 0x132   : > { %v355_v14 = vpop.f32.mrf.mxu0  ;;  %v430_v15 = vpop.f32.mrf.mxu1 }
 0x133   : > { %v699_v16 = vadd.f32 %v1048_v26, %v670_v13  ;;  %v621_v18 = vmax.f32 %v355_v14, %v430_v15 }
 0x135   : > { %v724_v17 = vmax.f32 %v699_v16, 0.0 }
 0x136   : > { %v505_v19 = vpop.f32.mrf.mxu2  ;;  %v580_v20 = vpop.f32.mrf.mxu3 }
 0x137   : > { %749 = vst [vmem:[%s1059_s30 + $0x80] sm:$0xff] %v724_v17  ;;  %v646_v21 = vmax.f32 %v505_v19, %v580_v20 }
 0x139   : > { %v671_v22 = vmax.f32 %v621_v18, %v646_v21 }
 0x13a   : > { %v358_v23 = vpop.f32.mrf.mxu0  ;;  %v433_v24 = vpop.f32.mrf.mxu1 }
 0x13b   : > { %v700_v25 = vadd.f32 %v1048_v26, %v671_v22  ;;  %v622_v28 = vmax.f32 %v358_v23, %v433_v24 }
 0x13d   : > { %v725_v27 = vmax.f32 %v700_v25, 0.0 }
 0x13e   : > { %v508_v29 = vpop.f32.mrf.mxu2  ;;  %v583_v30 = vpop.f32.mrf.mxu3 }
 0x13f   : > { %750 = vst [vmem:[%s1059_s30 + $0x88] sm:$0xff] %v725_v27  ;;  %v647_v31 = vmax.f32 %v508_v29, %v583_v30 }
 0x141   : > { %v672_v32 = vmax.f32 %v622_v28, %v647_v31 }
 0x142   : > { %v361_v33 = vpop.f32.mrf.mxu0  ;;  %v436_v34 = vpop.f32.mrf.mxu1 }
 0x143   : > { %v701_v35 = vadd.f32 %v1048_v26, %v672_v32  ;;  %v623_v37 = vmax.f32 %v361_v33, %v436_v34 }
 0x145   : > { %v726_v36 = vmax.f32 %v701_v35, 0.0 }
 0x146   : > { %v511_v38 = vpop.f32.mrf.mxu2  ;;  %v586_v39 = vpop.f32.mrf.mxu3 }
 0x147   : > { %751 = vst [vmem:[%s1059_s30 + $0x90] sm:$0xff] %v726_v36  ;;  %v648_v40 = vmax.f32 %v511_v38, %v586_v39 }
 0x149   : > { %v673_v41 = vmax.f32 %v623_v37, %v648_v40 }
 0x14a   : > { %v364_v42 = vpop.f32.mrf.mxu0  ;;  %v439_v43 = vpop.f32.mrf.mxu1 }
 0x14b   : > { %v702_v44 = vadd.f32 %v1048_v26, %v673_v41  ;;  %v624_v46 = vmax.f32 %v364_v42, %v439_v43 }
 0x14d   : > { %v727_v45 = vmax.f32 %v702_v44, 0.0 }
 0x14e   : > { %v514_v47 = vpop.f32.mrf.mxu2  ;;  %v589_v48 = vpop.f32.mrf.mxu3 }
 0x14f   : > { %752 = vst [vmem:[%s1059_s30 + $0x98] sm:$0xff] %v727_v45  ;;  %v649_v49 = vmax.f32 %v514_v47, %v589_v48 }
 0x151   : > { %v674_v50 = vmax.f32 %v624_v46, %v649_v49 }
 0x152   : > { %v367_v51 = vpop.f32.mrf.mxu0  ;;  %v442_v52 = vpop.f32.mrf.mxu1 }
 0x153   : > { %v703_v53 = vadd.f32 %v1048_v26, %v674_v50  ;;  %v625_v55 = vmax.f32 %v367_v51, %v442_v52 }
 0x155   : > { %v728_v54 = vmax.f32 %v703_v53, 0.0 }
 0x156   : > { %v517_v56 = vpop.f32.mrf.mxu2  ;;  %v592_v57 = vpop.f32.mrf.mxu3 }
 0x157   : > { %753 = vst [vmem:[%s1059_s30 + $0xa0] sm:$0xff] %v728_v54  ;;  %v650_v58 = vmax.f32 %v517_v56, %v592_v57 }
 0x159   : > { %v675_v59 = vmax.f32 %v625_v55, %v650_v58 }
 0x15a   : > { %v370_v60 = vpop.f32.mrf.mxu0  ;;  %v445_v61 = vpop.f32.mrf.mxu1 }
 0x15b   : > { %v704_v62 = vadd.f32 %v1048_v26, %v675_v59  ;;  %v626_v0 = vmax.f32 %v370_v60, %v445_v61 }
 0x15d   : > { %v729_v63 = vmax.f32 %v704_v62, 0.0 }
 0x15e   : > { %v520_v1 = vpop.f32.mrf.mxu2  ;;  %v595_v2 = vpop.f32.mrf.mxu3 }
 0x15f   : > { %754 = vst [vmem:[%s1059_s30 + $0xa8] sm:$0xff] %v729_v63  ;;  %v651_v3 = vmax.f32 %v520_v1, %v595_v2 }
 0x161   : > { %v676_v4 = vmax.f32 %v626_v0, %v651_v3 }
 0x162   : > { %v373_v5 = vpop.f32.mrf.mxu0  ;;  %v448_v6 = vpop.f32.mrf.mxu1 }
 0x163   : > { %v705_v7 = vadd.f32 %v1048_v26, %v676_v4  ;;  %v627_v9 = vmax.f32 %v373_v5, %v448_v6 }
 0x165   : > { %v730_v8 = vmax.f32 %v705_v7, 0.0 }
 0x166   : > { %v523_v10 = vpop.f32.mrf.mxu2  ;;  %v598_v11 = vpop.f32.mrf.mxu3 }
 0x167   : > { %755 = vst [vmem:[%s1059_s30 + $0xb0] sm:$0xff] %v730_v8  ;;  %v652_v12 = vmax.f32 %v523_v10, %v598_v11 }
 0x169   : > { %v677_v13 = vmax.f32 %v627_v9, %v652_v12 }
 0x16a   : > { %v376_v14 = vpop.f32.mrf.mxu0  ;;  %v451_v15 = vpop.f32.mrf.mxu1 }
 0x16b   : > { %v706_v16 = vadd.f32 %v1048_v26, %v677_v13  ;;  %v628_v18 = vmax.f32 %v376_v14, %v451_v15 }
 0x16d   : > { %v731_v17 = vmax.f32 %v706_v16, 0.0 }
 0x16e   : > { %v526_v19 = vpop.f32.mrf.mxu2  ;;  %v601_v20 = vpop.f32.mrf.mxu3 }
 0x16f   : > { %756 = vst [vmem:[%s1059_s30 + $0xb8] sm:$0xff] %v731_v17  ;;  %v653_v21 = vmax.f32 %v526_v19, %v601_v20 }
 0x171   : > { %v678_v22 = vmax.f32 %v628_v18, %v653_v21 }
 0x173   : > { %v707_v23 = vadd.f32 %v1048_v26, %v678_v22 }
 0x175   : > { %v732_v24 = vmax.f32 %v707_v23, 0.0 }
 0x177   : > { %757 = vst [vmem:[%s1059_s30 + $0xc0] sm:$0xff] %v732_v24 }
 0x178 PF: > { %s13_s12 = sadd.s32 1, %s887_s12  }
 0x179   : > { %p10_p4 = scmp.ge.s32.totalorder %s13_s12, 4  }
 0x17b   :  { %12 = sbr.rel (!%p10_p4) target bundleno = 1 (0x1), region = 62 }

// kernel: net_forward.4
= control target key start
LH: loop header
LB: loop body
LE: loop exit
PB: predicated region body
PF: predicated region fallthrough
CT: control target
= control target key end

     0   :  { %s530_s12 = smov 0   ;;  %s694_s0 = inlined_call_operand.vmem [shape: f32[2,4,32,256], index: 0, kind: input, shape index: {}]   ;;  %s695_s1 = inlined_call_operand.vmem [shape: f32[256,128], index: 1, kind: input, shape index: {}]   ;;  %s696_s2 = inlined_call_operand.vmem [shape: f32[1,128], index: 2, kind: input, shape index: {}]   ;;  %s697_s3 = inlined_call_operand.vmem [shape: f32[2,32,128], index: 3, kind: output, shape index: {}]  }
   0x1 LB: > { %s448_s13 = sadd.s32 4294967295, %s508_s12   ;;  %p452_p0 = scmp.ge.s32.totalorder %s508_s12, 1  ;;  %s508_s12 = sphi %s530_s12, %s13_s12  }
   0x2   : > { %p137_p1 = scmp.lt.s32.totalorder %s508_s12, 3 }
   0x4   : > { %p138_p2 = pnand %p452_p0, %p137_p1 }
   0x5   : > { %p161_p3 = scmp.lt.s32.totalorder (!%p138_p2), %s448_s13, 1 }
   0x6   : > { %141 = sbr.rel (%p138_p2) target bundleno = 244 (0xf4), region = 32 }
   0xb   : > { %v218_v0 = vld [vmem:[%s695_s1 + $0x78] sm:$0xff]  ;;  %v217_v2 = vld [vmem:[%s695_s1 + $0x70] sm:$0xff]  ;;  %v216_v4 = vld [vmem:[%s695_s1 + $0x68] sm:$0xff]  ;;  %s699_s13 = smov (!%p161_p3, %s448_s13), 1 }
   0xc   : > { %v234_v1 = vld [vmem:[%s695_s1 + $0xf8] sm:$0xff]  ;;  %235 = vmatpush.msra.mxu0 %v218_v0  ;;  %461 = vmatpush.msra.mxu2 %v218_v0  ;;  %v233_v3 = vld [vmem:[%s695_s1 + $0xf0] sm:$0xff]  ;;  %v232_v5 = vld [vmem:[%s695_s1 + $0xe8] sm:$0xff]  ;;  %s459_s18 = sshll.u32 %s699_s13, 8  ;;  %s460_s7 = sshll.u32 %s699_s13, 5 }
   0xd   : > { %300 = vmatpush.msra.mxu1 %v234_v1  ;;  %477 = vmatpush.msra.mxu3 %v234_v1  ;;  %v215_v6 = vld [vmem:[%s695_s1 + $0x60] sm:$0xff]  ;;  %v214_v8 = vld [vmem:[%s695_s1 + $0x58] sm:$0xff]  ;;  %v213_v10 = vld [vmem:[%s695_s1 + $0x50] sm:$0xff]  ;;  %s638_s27 = scalar_lea.vmem %s694_s0, %s459_s18  ;;  %s685_s10 = scalar_lea.vmem %s697_s3, %s460_s7 }
   0xe   : > { %236 = vmatpush.msra.mxu0 %v217_v2  ;;  %462 = vmatpush.msra.mxu2 %v217_v2  ;;  %v231_v7 = vld [vmem:[%s695_s1 + $0xe0] sm:$0xff]  ;;  %v230_v9 = vld [vmem:[%s695_s1 + $0xd8] sm:$0xff]  ;;  %v229_v11 = vld [vmem:[%s695_s1 + $0xd0] sm:$0xff] }
   0xf   : > { %301 = vmatpush.msra.mxu1 %v233_v3  ;;  %478 = vmatpush.msra.mxu3 %v233_v3  ;;  %v212_v12 = vld [vmem:[%s695_s1 + $0x48] sm:$0xff]  ;;  %v211_v14 = vld [vmem:[%s695_s1 + $0x40] sm:$0xff]  ;;  %v210_v16 = vld [vmem:[%s695_s1 + $0x38] sm:$0xff] }
  0x10   : > { %237 = vmatpush.msra.mxu0 %v216_v4  ;;  %463 = vmatpush.msra.mxu2 %v216_v4  ;;  %v228_v13 = vld [vmem:[%s695_s1 + $0xc8] sm:$0xff]  ;;  %v227_v15 = vld [vmem:[%s695_s1 + $0xc0] sm:$0xff]  ;;  %v226_v17 = vld [vmem:[%s695_s1 + $0xb8] sm:$0xff] }
  0x11   : > { %302 = vmatpush.msra.mxu1 %v232_v5  ;;  %479 = vmatpush.msra.mxu3 %v232_v5  ;;  %v209_v18 = vld [vmem:[%s695_s1 + $0x30] sm:$0xff]  ;;  %v208_v20 = vld [vmem:[%s695_s1 + $0x28] sm:$0xff]  ;;  %v207_v22 = vld [vmem:[%s695_s1 + $0x20] sm:$0xff] }
  0x12   : > { %238 = vmatpush.msra.mxu0 %v215_v6  ;;  %464 = vmatpush.msra.mxu2 %v215_v6  ;;  %v225_v19 = vld [vmem:[%s695_s1 + $0xb0] sm:$0xff]  ;;  %v224_v21 = vld [vmem:[%s695_s1 + $0xa8] sm:$0xff]  ;;  %v223_v23 = vld [vmem:[%s695_s1 + $0xa0] sm:$0xff] }
  0x13   : > { %303 = vmatpush.msra.mxu1 %v231_v7  ;;  %480 = vmatpush.msra.mxu3 %v231_v7  ;;  %v206_v24 = vld [vmem:[%s695_s1 + $0x18] sm:$0xff]  ;;  %v205_v26 = vld [vmem:[%s695_s1 + $0x10] sm:$0xff]  ;;  %v204_v28 = vld [vmem:[%s695_s1 + $0x8] sm:$0xff] }
  0x14   : > { %239 = vmatpush.msra.mxu0 %v214_v8  ;;  %465 = vmatpush.msra.mxu2 %v214_v8  ;;  %v222_v25 = vld [vmem:[%s695_s1 + $0x98] sm:$0xff]  ;;  %v221_v27 = vld [vmem:[%s695_s1 + $0x90] sm:$0xff]  ;;  %v220_v29 = vld [vmem:[%s695_s1 + $0x88] sm:$0xff] }
  0x15   : > { %304 = vmatpush.msra.mxu1 %v230_v9  ;;  %481 = vmatpush.msra.mxu3 %v230_v9  ;;  %v203_v30 = vld [vmem:[%s695_s1] sm:$0xff]  ;;  %v172_v34 = vld [vmem:[%s638_s27 + $0x8] sm:$0xff]  ;;  %v173_v36 = vld [vmem:[%s638_s27 + $0x10] sm:$0xff] }
  0x16   : > { %240 = vmatpush.msra.mxu0 %v213_v10  ;;  %466 = vmatpush.msra.mxu2 %v213_v10  ;;  %v219_v31 = vld [vmem:[%s695_s1 + $0x80] sm:$0xff]  ;;  %v188_v35 = vld [vmem:[%s638_s27 + $0x88] sm:$0xff]  ;;  %v189_v37 = vld [vmem:[%s638_s27 + $0x90] sm:$0xff] }
  0x17   : > { %305 = vmatpush.msra.mxu1 %v229_v11  ;;  %482 = vmatpush.msra.mxu3 %v229_v11  ;;  %v171_v32 = vld [vmem:[%s638_s27] sm:$0xff]  ;;  %v174_v38 = vld [vmem:[%s638_s27 + $0x18] sm:$0xff]  ;;  %v176_v42 = vld [vmem:[%s638_s27 + $0x28] sm:$0xff] }
  0x18   : > { %241 = vmatpush.msra.mxu0 %v212_v12  ;;  %467 = vmatpush.msra.mxu2 %v212_v12  ;;  %v187_v33 = vld [vmem:[%s638_s27 + $0x80] sm:$0xff]  ;;  %v190_v39 = vld [vmem:[%s638_s27 + $0x98] sm:$0xff]  ;;  %v192_v43 = vld [vmem:[%s638_s27 + $0xa8] sm:$0xff] }
  0x19   : > { %306 = vmatpush.msra.mxu1 %v228_v13  ;;  %483 = vmatpush.msra.mxu3 %v228_v13  ;;  %v175_v40 = vld [vmem:[%s638_s27 + $0x20] sm:$0xff]  ;;  %v177_v44 = vld [vmem:[%s638_s27 + $0x30] sm:$0xff]  ;;  %v178_v46 = vld [vmem:[%s638_s27 + $0x38] sm:$0xff] }
  0x1a   : > { %242 = vmatpush.msra.mxu0 %v211_v14  ;;  %468 = vmatpush.msra.mxu2 %v211_v14  ;;  %v191_v41 = vld [vmem:[%s638_s27 + $0xa0] sm:$0xff]  ;;  %v193_v45 = vld [vmem:[%s638_s27 + $0xb0] sm:$0xff]  ;;  %v194_v47 = vld [vmem:[%s638_s27 + $0xb8] sm:$0xff] }
  0x1b   : > { %307 = vmatpush.msra.mxu1 %v227_v15  ;;  %484 = vmatpush.msra.mxu3 %v227_v15  ;;  %v179_v48 = vld [vmem:[%s638_s27 + $0x40] sm:$0xff]  ;;  %v180_v50 = vld [vmem:[%s638_s27 + $0x48] sm:$0xff]  ;;  %v181_v52 = vld [vmem:[%s638_s27 + $0x50] sm:$0xff] }
  0x1c   : > { %243 = vmatpush.msra.mxu0 %v210_v16  ;;  %469 = vmatpush.msra.mxu2 %v210_v16  ;;  %v195_v49 = vld [vmem:[%s638_s27 + $0xc0] sm:$0xff]  ;;  %v196_v51 = vld [vmem:[%s638_s27 + $0xc8] sm:$0xff]  ;;  %v197_v53 = vld [vmem:[%s638_s27 + $0xd0] sm:$0xff] }
  0x1d   : > { %308 = vmatpush.msra.mxu1 %v226_v17  ;;  %485 = vmatpush.msra.mxu3 %v226_v17  ;;  %v182_v54 = vld [vmem:[%s638_s27 + $0x58] sm:$0xff]  ;;  %v183_v56 = vld [vmem:[%s638_s27 + $0x60] sm:$0xff]  ;;  %v184_v58 = vld [vmem:[%s638_s27 + $0x68] sm:$0xff] }
  0x1e   : > { %244 = vmatpush.msra.mxu0 %v209_v18  ;;  %470 = vmatpush.msra.mxu2 %v209_v18  ;;  %v198_v55 = vld [vmem:[%s638_s27 + $0xd8] sm:$0xff]  ;;  %v199_v57 = vld [vmem:[%s638_s27 + $0xe0] sm:$0xff]  ;;  %v200_v59 = vld [vmem:[%s638_s27 + $0xe8] sm:$0xff] }
  0x1f   : > { %309 = vmatpush.msra.mxu1 %v225_v19  ;;  %486 = vmatpush.msra.mxu3 %v225_v19  ;;  %v185_v60 = vld [vmem:[%s638_s27 + $0x70] sm:$0xff]  ;;  %v186_v62 = vld [vmem:[%s638_s27 + $0x78] sm:$0xff] }
  0x20   : > { %245 = vmatpush.msra.mxu0 %v208_v20  ;;  %471 = vmatpush.msra.mxu2 %v208_v20  ;;  %v201_v61 = vld [vmem:[%s638_s27 + $0xf0] sm:$0xff]  ;;  %v202_v63 = vld [vmem:[%s638_s27 + $0xf8] sm:$0xff] }
  0x21   : > { %310 = vmatpush.msra.mxu1 %v224_v21  ;;  %487 = vmatpush.msra.mxu3 %v224_v21 }
  0x22   : > { %246 = vmatpush.msra.mxu0 %v207_v22  ;;  %472 = vmatpush.msra.mxu2 %v207_v22 }
  0x23   : > { %311 = vmatpush.msra.mxu1 %v223_v23  ;;  %488 = vmatpush.msra.mxu3 %v223_v23 }
  0x24   : > { %247 = vmatpush.msra.mxu0 %v206_v24  ;;  %473 = vmatpush.msra.mxu2 %v206_v24 }
  0x25   : > { %312 = vmatpush.msra.mxu1 %v222_v25  ;;  %489 = vmatpush.msra.mxu3 %v222_v25 }
  0x26   : > { %248 = vmatpush.msra.mxu0 %v205_v26  ;;  %474 = vmatpush.msra.mxu2 %v205_v26 }
  0x27   : > { %313 = vmatpush.msra.mxu1 %v221_v27  ;;  %490 = vmatpush.msra.mxu3 %v221_v27 }
  0x28   : > { %249 = vmatpush.msra.mxu0 %v204_v28  ;;  %475 = vmatpush.msra.mxu2 %v204_v28  ;;  %v501_v28 = vld [vmem:[%s696_s2] ss:$0 sm:$0xff] }
  0x29   : > { %314 = vmatpush.msra.mxu1 %v220_v29  ;;  %491 = vmatpush.msra.mxu3 %v220_v29 }
  0x2a   : > { %250 = vmatpush.msra.mxu0 %v203_v30  ;;  %476 = vmatpush.msra.mxu2 %v203_v30 }
  0x2b   : > { %315 = vmatpush.msra.mxu1 %v219_v31  ;;  %492 = vmatpush.msra.mxu3 %v219_v31 }
  0x2c   : > { %251 = vmatmul.f32.vlgmr.msra.gmra.mxu0 %v171_v32  ;;  %275 = vmatmul.f32.vlgmr.msra.gmra.mxu2 %v187_v33 }
  0x2d   : > { %316 = vmatmul.f32.vlgmr.msra.gmra.mxu1 %v172_v34  ;;  %340 = vmatmul.f32.vlgmr.msra.gmra.mxu3 %v188_v35 }
  0x34   : > { %254 = vmatmul.f32.gmra.mxu0 %v173_v36  ;;  %278 = vmatmul.f32.gmra.mxu2 %v189_v37 }
  0x35   : > { %319 = vmatmul.f32.gmra.mxu1 %v174_v38  ;;  %343 = vmatmul.f32.gmra.mxu3 %v190_v39 }
  0x3c   : > { %257 = vmatmul.f32.gmra.mxu0 %v175_v40  ;;  %281 = vmatmul.f32.gmra.mxu2 %v191_v41 }
  0x3d   : > { %322 = vmatmul.f32.gmra.mxu1 %v176_v42  ;;  %346 = vmatmul.f32.gmra.mxu3 %v192_v43 }
  0x44   : > { %260 = vmatmul.f32.gmra.mxu0 %v177_v44  ;;  %284 = vmatmul.f32.gmra.mxu2 %v193_v45 }
  0x45   : > { %325 = vmatmul.f32.gmra.mxu1 %v178_v46  ;;  %349 = vmatmul.f32.gmra.mxu3 %v194_v47 }
  0x4c   : > { %263 = vmatmul.f32.gmra.mxu0 %v179_v48  ;;  %287 = vmatmul.f32.gmra.mxu2 %v195_v49 }
  0x4d   : > { %328 = vmatmul.f32.gmra.mxu1 %v180_v50  ;;  %352 = vmatmul.f32.gmra.mxu3 %v196_v51 }
  0x54   : > { %266 = vmatmul.f32.gmra.mxu0 %v181_v52  ;;  %290 = vmatmul.f32.gmra.mxu2 %v197_v53 }
  0x55   : > { %331 = vmatmul.f32.gmra.mxu1 %v182_v54  ;;  %355 = vmatmul.f32.gmra.mxu3 %v198_v55 }
  0x5c   : > { %269 = vmatmul.f32.gmra.mxu0 %v183_v56  ;;  %293 = vmatmul.f32.gmra.mxu2 %v199_v57 }
  0x5d   : > { %334 = vmatmul.f32.gmra.mxu1 %v184_v58  ;;  %358 = vmatmul.f32.gmra.mxu3 %v200_v59 }
  0x64   : > { %272 = vmatmul.f32.gmra.mxu0 %v185_v60  ;;  %296 = vmatmul.f32.gmra.mxu2 %v201_v61 }
  0x65   : > { %337 = vmatmul.f32.gmra.mxu1 %v186_v62  ;;  %361 = vmatmul.f32.gmra.mxu3 %v202_v63 }
  0xa9   : > { %v252_v0 = vpop.f32.mrf.mxu0 }
  0xaa   : > { %v317_v1 = vpop.f32.mrf.mxu1 }
  0xab   : > { %v318_v21 = vadd.f32 %v317_v1, %v252_v0 }
  0xaf   : > { %v276_v2 = vpop.f32.mrf.mxu2 }
  0xb0   : > { %v341_v3 = vpop.f32.mrf.mxu3 }
  0xb1   : > { %v255_v4 = vpop.f32.mrf.mxu0  ;;  %v342_v22 = vadd.f32 %v341_v3, %v276_v2 }
  0xb2   : > { %v320_v5 = vpop.f32.mrf.mxu1 }
  0xb3   : > { %v321_v34 = vadd.f32 %v320_v5, %v255_v4 }
  0xb7   : > { %v279_v6 = vpop.f32.mrf.mxu2 }
  0xb8   : > { %v344_v7 = vpop.f32.mrf.mxu3 }
  0xb9   : > { %v258_v8 = vpop.f32.mrf.mxu0  ;;  %v345_v35 = vadd.f32 %v344_v7, %v279_v6 }
  0xba   : > { %v323_v9 = vpop.f32.mrf.mxu1 }
  0xbb   : > { %v324_v47 = vadd.f32 %v323_v9, %v258_v8 }
  0xbf   : > { %v282_v10 = vpop.f32.mrf.mxu2 }
  0xc0   : > { %v347_v11 = vpop.f32.mrf.mxu3 }
  0xc1   : > { %v261_v12 = vpop.f32.mrf.mxu0  ;;  %v348_v48 = vadd.f32 %v347_v11, %v282_v10 }
  0xc2   : > { %v326_v13 = vpop.f32.mrf.mxu1 }
  0xc3   : > { %v327_v60 = vadd.f32 %v326_v13, %v261_v12 }
  0xc7   : > { %v285_v14 = vpop.f32.mrf.mxu2 }
  0xc8   : > { %v350_v15 = vpop.f32.mrf.mxu3 }
  0xc9   : > { %v264_v16 = vpop.f32.mrf.mxu0  ;;  %v351_v61 = vadd.f32 %v350_v15, %v285_v14 }
  0xca   : > { %v329_v17 = vpop.f32.mrf.mxu1 }
  0xcb   : > { %v330_v18 = vadd.f32 %v329_v17, %v264_v16 }
  0xcd   : > { %v365_v26 = vmax.f32 %v318_v21, %v330_v18 }
  0xcf   : > { %v288_v19 = vpop.f32.mrf.mxu2 }
  0xd0   : > { %v353_v20 = vpop.f32.mrf.mxu3 }
  0xd1   : > { %v354_v23 = vadd.f32 %v353_v20, %v288_v19  ;;  %v267_v24 = vpop.f32.mrf.mxu0 }
  0xd2   : > { %v332_v25 = vpop.f32.mrf.mxu1 }
  0xd3   : > { %v369_v27 = vmax.f32 %v342_v22, %v354_v23  ;;  %v333_v31 = vadd.f32 %v332_v25, %v267_v24 }
  0xd5   : > { %v373_v29 = vmax.f32 %v365_v26, %v369_v27  ;;  %v366_v40 = vmax.f32 %v321_v34, %v333_v31 }
  0xd7   : > { %v381_v30 = vadd.f32 %v501_v28, %v373_v29  ;;  %v291_v32 = vpop.f32.mrf.mxu2 }
  0xd8   : > { %v356_v33 = vpop.f32.mrf.mxu3 }
  0xd9   : > { %v385_v36 = vmax.f32 %v381_v30, 0.0  ;;  %v357_v37 = vadd.f32 %v356_v33, %v291_v32  ;;  %v270_v38 = vpop.f32.mrf.mxu0 }
  0xda   : > { %v335_v39 = vpop.f32.mrf.mxu1 }
  0xdb   : > { %389 = vst [vmem:[%s685_s10] sm:$0xff] %v385_v36  ;;  %v370_v41 = vmax.f32 %v345_v35, %v357_v37  ;;  %v336_v44 = vadd.f32 %v335_v39, %v270_v38 }
  0xdd   : > { %v374_v42 = vmax.f32 %v366_v40, %v370_v41  ;;  %v367_v51 = vmax.f32 %v324_v47, %v336_v44 }
  0xdf   : > { %v382_v43 = vadd.f32 %v501_v28, %v374_v42  ;;  %v294_v45 = vpop.f32.mrf.mxu2 }
  0xe0   : > { %v359_v46 = vpop.f32.mrf.mxu3 }
  0xe1   : > { %v386_v49 = vmax.f32 %v382_v43, 0.0  ;;  %v360_v50 = vadd.f32 %v359_v46, %v294_v45  ;;  %v273_v53 = vpop.f32.mrf.mxu0 }
  0xe2   : > { %v338_v54 = vpop.f32.mrf.mxu1 }
  0xe3   : > { %390 = vst [vmem:[%s685_s10 + $0x8] sm:$0xff] %v386_v49  ;;  %v371_v52 = vmax.f32 %v348_v48, %v360_v50  ;;  %v339_v57 = vadd.f32 %v338_v54, %v273_v53 }
  0xe5   : > { %v375_v55 = vmax.f32 %v367_v51, %v371_v52  ;;  %v368_v0 = vmax.f32 %v327_v60, %v339_v57 }
  0xe7   : > { %v383_v56 = vadd.f32 %v501_v28, %v375_v55  ;;  %v297_v58 = vpop.f32.mrf.mxu2 }
  0xe8   : > { %v362_v59 = vpop.f32.mrf.mxu3 }
  0xe9   : > { %v387_v62 = vmax.f32 %v383_v56, 0.0  ;;  %v363_v63 = vadd.f32 %v362_v59, %v297_v58 }
  0xeb   : > { %391 = vst [vmem:[%s685_s10 + $0x10] sm:$0xff] %v387_v62  ;;  %v372_v1 = vmax.f32 %v351_v61, %v363_v63 }
  0xed   : > { %v376_v2 = vmax.f32 %v368_v0, %v372_v1 }
  0xef   : > { %v384_v3 = vadd.f32 %v501_v28, %v376_v2 }
  0xf1   : > { %v388_v4 = vmax.f32 %v384_v3, 0.0 }
  0xf3   : > { %392 = vst [vmem:[%s685_s10 + $0x18] sm:$0xff] %v388_v4 }
  0xf4 PF: > { %s13_s12 = sadd.s32 1, %s508_s12  }
  0xf5   : > { %p10_p4 = scmp.ge.s32.totalorder %s13_s12, 4  }
  0xf7   :  { %12 = sbr.rel (!%p10_p4) target bundleno = 1 (0x1), region = 62 }

// kernel: net_forward.5
= control target key start
LH: loop header
LB: loop body
LE: loop exit
PB: predicated region body
PF: predicated region fallthrough
CT: control target
= control target key end

     0   :  { %s620_s1 = inlined_call_operand.vmem [shape: f32[512,128], index: 1, kind: input, shape index: {}]   ;;  %s621_s2 = inlined_call_operand.vmem [shape: f32[1,128], index: 2, kind: input, shape index: {}]   ;;  %s622_s0 = inlined_call_operand.vmem [shape: f32[8,512], index: 0, kind: input, shape index: {}]   ;;  %s623_s3 = inlined_call_operand.vmem [shape: f32[128,128], index: 3, kind: input, shape index: {}]   ;;  %s624_s4 = inlined_call_operand.vmem [shape: f32[1,128], index: 4, kind: input, shape index: {}]   ;;  %s625_s5 = inlined_call_operand.vmem [shape: f32[128,128], index: 5, kind: input, shape index: {}]   ;;  %s626_s6 = inlined_call_operand.vmem [shape: f32[1,128], index: 6, kind: input, shape index: {}]   ;;  %s627_s7 = inlined_call_operand.vmem [shape: f32[8,128], index: 7, kind: output, shape index: {}]  }
   0x1   :  { %v77_v0 = vld [vmem:[%s620_s1 + $0x178] sm:$0xff]  ;;  %v76_v2 = vld [vmem:[%s620_s1 + $0x170] sm:$0xff]  ;;  %v75_v6 = vld [vmem:[%s620_s1 + $0x168] sm:$0xff] }
   0x2   :  { %v45_v1 = vld [vmem:[%s620_s1 + $0x78] sm:$0xff]  ;;  %138 = vmatpush.msra.mxu2 %v77_v0  ;;  %v44_v4 = vld [vmem:[%s620_s1 + $0x70] sm:$0xff]  ;;  %v43_v8 = vld [vmem:[%s620_s1 + $0x68] sm:$0xff] }
   0x3   :  { %98 = vmatpush.msra.mxu0 %v45_v1  ;;  %v93_v3 = vld [vmem:[%s620_s1 + $0x1f8] sm:$0xff]  ;;  %v92_v7 = vld [vmem:[%s620_s1 + $0x1f0] sm:$0xff]  ;;  %v91_v10 = vld [vmem:[%s620_s1 + $0x1e8] sm:$0xff] }
   0x4   :  { %v61_v5 = vld [vmem:[%s620_s1 + $0xf8] sm:$0xff]  ;;  %158 = vmatpush.msra.mxu3 %v93_v3  ;;  %139 = vmatpush.msra.mxu2 %v76_v2  ;;  %v60_v9 = vld [vmem:[%s620_s1 + $0xf0] sm:$0xff]  ;;  %v74_v11 = vld [vmem:[%s620_s1 + $0x160] sm:$0xff] }
   0x5   :  { %118 = vmatpush.msra.mxu1 %v61_v5  ;;  %99 = vmatpush.msra.mxu0 %v44_v4  ;;  %v42_v12 = vld [vmem:[%s620_s1 + $0x60] sm:$0xff]  ;;  %v59_v13 = vld [vmem:[%s620_s1 + $0xe8] sm:$0xff]  ;;  %v73_v16 = vld [vmem:[%s620_s1 + $0x158] sm:$0xff] }
   0x6   :  { %159 = vmatpush.msra.mxu3 %v92_v7  ;;  %140 = vmatpush.msra.mxu2 %v75_v6  ;;  %v90_v14 = vld [vmem:[%s620_s1 + $0x1e0] sm:$0xff]  ;;  %v41_v17 = vld [vmem:[%s620_s1 + $0x58] sm:$0xff]  ;;  %v72_v20 = vld [vmem:[%s620_s1 + $0x150] sm:$0xff] }
   0x7   :  { %119 = vmatpush.msra.mxu1 %v60_v9  ;;  %100 = vmatpush.msra.mxu0 %v43_v8  ;;  %v58_v15 = vld [vmem:[%s620_s1 + $0xe0] sm:$0xff]  ;;  %v89_v18 = vld [vmem:[%s620_s1 + $0x1d8] sm:$0xff]  ;;  %v40_v21 = vld [vmem:[%s620_s1 + $0x50] sm:$0xff] }
   0x8   :  { %160 = vmatpush.msra.mxu3 %v91_v10  ;;  %141 = vmatpush.msra.mxu2 %v74_v11  ;;  %v57_v19 = vld [vmem:[%s620_s1 + $0xd8] sm:$0xff]  ;;  %v88_v22 = vld [vmem:[%s620_s1 + $0x1d0] sm:$0xff]  ;;  %v71_v24 = vld [vmem:[%s620_s1 + $0x148] sm:$0xff] }
   0x9   :  { %120 = vmatpush.msra.mxu1 %v59_v13  ;;  %101 = vmatpush.msra.mxu0 %v42_v12  ;;  %v56_v23 = vld [vmem:[%s620_s1 + $0xd0] sm:$0xff]  ;;  %v39_v25 = vld [vmem:[%s620_s1 + $0x48] sm:$0xff]  ;;  %v70_v28 = vld [vmem:[%s620_s1 + $0x140] sm:$0xff] }
   0xa   :  { %161 = vmatpush.msra.mxu3 %v90_v14  ;;  %142 = vmatpush.msra.mxu2 %v73_v16  ;;  %v87_v26 = vld [vmem:[%s620_s1 + $0x1c8] sm:$0xff]  ;;  %v38_v29 = vld [vmem:[%s620_s1 + $0x40] sm:$0xff]  ;;  %v69_v32 = vld [vmem:[%s620_s1 + $0x138] sm:$0xff] }
   0xb   :  { %121 = vmatpush.msra.mxu1 %v58_v15  ;;  %102 = vmatpush.msra.mxu0 %v41_v17  ;;  %v55_v27 = vld [vmem:[%s620_s1 + $0xc8] sm:$0xff]  ;;  %v86_v30 = vld [vmem:[%s620_s1 + $0x1c0] sm:$0xff]  ;;  %v37_v33 = vld [vmem:[%s620_s1 + $0x38] sm:$0xff] }
   0xc   :  { %162 = vmatpush.msra.mxu3 %v89_v18  ;;  %143 = vmatpush.msra.mxu2 %v72_v20  ;;  %v54_v31 = vld [vmem:[%s620_s1 + $0xc0] sm:$0xff]  ;;  %v85_v34 = vld [vmem:[%s620_s1 + $0x1b8] sm:$0xff]  ;;  %v68_v36 = vld [vmem:[%s620_s1 + $0x130] sm:$0xff] }
   0xd   :  { %122 = vmatpush.msra.mxu1 %v57_v19  ;;  %103 = vmatpush.msra.mxu0 %v40_v21  ;;  %v53_v35 = vld [vmem:[%s620_s1 + $0xb8] sm:$0xff]  ;;  %v36_v37 = vld [vmem:[%s620_s1 + $0x30] sm:$0xff]  ;;  %v67_v40 = vld [vmem:[%s620_s1 + $0x128] sm:$0xff] }
   0xe   :  { %163 = vmatpush.msra.mxu3 %v88_v22  ;;  %144 = vmatpush.msra.mxu2 %v71_v24  ;;  %v84_v38 = vld [vmem:[%s620_s1 + $0x1b0] sm:$0xff]  ;;  %v35_v41 = vld [vmem:[%s620_s1 + $0x28] sm:$0xff]  ;;  %v66_v44 = vld [vmem:[%s620_s1 + $0x120] sm:$0xff] }
   0xf   :  { %123 = vmatpush.msra.mxu1 %v56_v23  ;;  %104 = vmatpush.msra.mxu0 %v39_v25  ;;  %v52_v39 = vld [vmem:[%s620_s1 + $0xb0] sm:$0xff]  ;;  %v83_v42 = vld [vmem:[%s620_s1 + $0x1a8] sm:$0xff]  ;;  %v34_v45 = vld [vmem:[%s620_s1 + $0x20] sm:$0xff] }
  0x10   :  { %164 = vmatpush.msra.mxu3 %v87_v26  ;;  %145 = vmatpush.msra.mxu2 %v70_v28  ;;  %v51_v43 = vld [vmem:[%s620_s1 + $0xa8] sm:$0xff]  ;;  %v82_v46 = vld [vmem:[%s620_s1 + $0x1a0] sm:$0xff]  ;;  %v65_v48 = vld [vmem:[%s620_s1 + $0x118] sm:$0xff] }
  0x11   :  { %124 = vmatpush.msra.mxu1 %v55_v27  ;;  %105 = vmatpush.msra.mxu0 %v38_v29  ;;  %v50_v47 = vld [vmem:[%s620_s1 + $0xa0] sm:$0xff]  ;;  %v33_v49 = vld [vmem:[%s620_s1 + $0x18] sm:$0xff]  ;;  %v64_v52 = vld [vmem:[%s620_s1 + $0x110] sm:$0xff] }
  0x12   :  { %165 = vmatpush.msra.mxu3 %v86_v30  ;;  %146 = vmatpush.msra.mxu2 %v69_v32  ;;  %v81_v50 = vld [vmem:[%s620_s1 + $0x198] sm:$0xff]  ;;  %v32_v53 = vld [vmem:[%s620_s1 + $0x10] sm:$0xff]  ;;  %v63_v56 = vld [vmem:[%s620_s1 + $0x108] sm:$0xff] }
  0x13   :  { %125 = vmatpush.msra.mxu1 %v54_v31  ;;  %106 = vmatpush.msra.mxu0 %v37_v33  ;;  %v49_v51 = vld [vmem:[%s620_s1 + $0x98] sm:$0xff]  ;;  %v80_v54 = vld [vmem:[%s620_s1 + $0x190] sm:$0xff]  ;;  %v31_v57 = vld [vmem:[%s620_s1 + $0x8] sm:$0xff] }
  0x14   :  { %166 = vmatpush.msra.mxu3 %v85_v34  ;;  %147 = vmatpush.msra.mxu2 %v68_v36  ;;  %v48_v55 = vld [vmem:[%s620_s1 + $0x90] sm:$0xff]  ;;  %v79_v58 = vld [vmem:[%s620_s1 + $0x188] sm:$0xff]  ;;  %v62_v60 = vld [vmem:[%s620_s1 + $0x100] sm:$0xff] }
  0x15   :  { %126 = vmatpush.msra.mxu1 %v53_v35  ;;  %107 = vmatpush.msra.mxu0 %v36_v37  ;;  %v47_v59 = vld [vmem:[%s620_s1 + $0x88] sm:$0xff]  ;;  %v30_v61 = vld [vmem:[%s620_s1] sm:$0xff]  ;;  %v28_v62 = vld [vmem:[%s622_s0 + $0x10] sm:$0xff] }
  0x16   :  { %167 = vmatpush.msra.mxu3 %v84_v38  ;;  %148 = vmatpush.msra.mxu2 %v67_v40  ;;  %v78_v63 = vld [vmem:[%s620_s1 + $0x180] sm:$0xff]  ;;  %v29_v1 = vld [vmem:[%s622_s0 + $0x18] sm:$0xff]  ;;  %v27_v4 = vld [vmem:[%s622_s0 + $0x8] sm:$0xff] }
  0x17   :  { %127 = vmatpush.msra.mxu1 %v52_v39  ;;  %108 = vmatpush.msra.mxu0 %v35_v41  ;;  %v26_v0 = vld [vmem:[%s622_s0] sm:$0xff]  ;;  %v194_v3 = vld [vmem:[%s623_s3 + $0x78] sm:$0xff]  ;;  %v193_v5 = vld [vmem:[%s623_s3 + $0x70] sm:$0xff] }
  0x18   :  { %168 = vmatpush.msra.mxu3 %v83_v42  ;;  %149 = vmatpush.msra.mxu2 %v66_v44  ;;  %v46_v2 = vld [vmem:[%s620_s1 + $0x80] sm:$0xff]  ;;  %v192_v6 = vld [vmem:[%s623_s3 + $0x68] sm:$0xff]  ;;  %v190_v8 = vld [vmem:[%s623_s3 + $0x58] sm:$0xff] }
  0x19   :  { %128 = vmatpush.msra.mxu1 %v51_v43  ;;  %109 = vmatpush.msra.mxu0 %v34_v45  ;;  %v191_v7 = vld [vmem:[%s623_s3 + $0x60] sm:$0xff]  ;;  %v189_v9 = vld [vmem:[%s623_s3 + $0x50] sm:$0xff]  ;;  %v188_v10 = vld [vmem:[%s623_s3 + $0x48] sm:$0xff] }
  0x1a   :  { %169 = vmatpush.msra.mxu3 %v82_v46  ;;  %150 = vmatpush.msra.mxu2 %v65_v48  ;;  %v187_v11 = vld [vmem:[%s623_s3 + $0x40] sm:$0xff]  ;;  %v186_v12 = vld [vmem:[%s623_s3 + $0x38] sm:$0xff]  ;;  %v185_v13 = vld [vmem:[%s623_s3 + $0x30] sm:$0xff] }
  0x1b   :  { %129 = vmatpush.msra.mxu1 %v50_v47  ;;  %110 = vmatpush.msra.mxu0 %v33_v49  ;;  %v184_v14 = vld [vmem:[%s623_s3 + $0x28] sm:$0xff]  ;;  %v183_v15 = vld [vmem:[%s623_s3 + $0x20] sm:$0xff]  ;;  %v182_v16 = vld [vmem:[%s623_s3 + $0x18] sm:$0xff] }
  0x1c   :  { %170 = vmatpush.msra.mxu3 %v81_v50  ;;  %151 = vmatpush.msra.mxu2 %v64_v52  ;;  %v181_v17 = vld [vmem:[%s623_s3 + $0x10] sm:$0xff]  ;;  %v180_v18 = vld [vmem:[%s623_s3 + $0x8] sm:$0xff]  ;;  %v179_v19 = vld [vmem:[%s623_s3] sm:$0xff] }
  0x1d   :  { %130 = vmatpush.msra.mxu1 %v49_v51  ;;  %111 = vmatpush.msra.mxu0 %v32_v53  ;;  %v235_v20 = vld [vmem:[%s625_s5 + $0x78] sm:$0xff]  ;;  %v234_v21 = vld [vmem:[%s625_s5 + $0x70] sm:$0xff]  ;;  %v233_v22 = vld [vmem:[%s625_s5 + $0x68] sm:$0xff] }
  0x1e   :  { %171 = vmatpush.msra.mxu3 %v80_v54  ;;  %152 = vmatpush.msra.mxu2 %v63_v56  ;;  %v232_v23 = vld [vmem:[%s625_s5 + $0x60] sm:$0xff]  ;;  %v231_v24 = vld [vmem:[%s625_s5 + $0x58] sm:$0xff]  ;;  %v230_v25 = vld [vmem:[%s625_s5 + $0x50] sm:$0xff] }
  0x1f   :  { %131 = vmatpush.msra.mxu1 %v48_v55  ;;  %112 = vmatpush.msra.mxu0 %v31_v57  ;;  %v229_v26 = vld [vmem:[%s625_s5 + $0x48] sm:$0xff]  ;;  %v228_v27 = vld [vmem:[%s625_s5 + $0x40] sm:$0xff]  ;;  %v227_v28 = vld [vmem:[%s625_s5 + $0x38] sm:$0xff] }
  0x20   :  { %172 = vmatpush.msra.mxu3 %v79_v58  ;;  %153 = vmatpush.msra.mxu2 %v62_v60  ;;  %v226_v29 = vld [vmem:[%s625_s5 + $0x30] sm:$0xff]  ;;  %v265_v30 = vld [vmem:[%s621_s2] ss:$0 sm:$0xff]  ;;  %v225_v31 = vld [vmem:[%s625_s5 + $0x28] sm:$0xff] }
  0x21   :  { %132 = vmatpush.msra.mxu1 %v47_v59  ;;  %113 = vmatpush.msra.mxu0 %v30_v61  ;;  %v224_v33 = vld [vmem:[%s625_s5 + $0x20] sm:$0xff]  ;;  %v223_v36 = vld [vmem:[%s625_s5 + $0x18] sm:$0xff]  ;;  %v222_v43 = vld [vmem:[%s625_s5 + $0x10] sm:$0xff] }
  0x22   :  { %154 = vmatmul.f32.vlgmr.msra.gmra.mxu2 %v28_v62  ;;  %173 = vmatpush.msra.mxu3 %v78_v63  ;;  %v221_v44 = vld [vmem:[%s625_s5 + $0x8] sm:$0xff]  ;;  %v220_v45 = vld [vmem:[%s625_s5] sm:$0xff] }
  0x23   :  { %114 = vmatmul.f32.vlgmr.msra.gmra.mxu0 %v26_v0  ;;  %174 = vmatmul.f32.vlgmr.msra.gmra.mxu3 %v29_v1  ;;  %v266_v46 = vld [vmem:[%s624_s4] ss:$0 sm:$0xff] }
  0x24   :  { %133 = vmatpush.msra.mxu1 %v46_v2  ;;  %199 = vmatpush.msrb.mxu0 %v194_v3  ;;  %v267_v50 = vld [vmem:[%s626_s6] ss:$0 sm:$0xff] }
  0x25   :  { %134 = vmatmul.f32.vlgmr.msra.gmra.mxu1 %v27_v4 }
  0x26   :  { %200 = vmatpush.msrb.mxu0 %v193_v5  ;;  %240 = vmatpush.msrb.mxu1 %v235_v20 }
  0x28   :  { %201 = vmatpush.msrb.mxu0 %v192_v6  ;;  %241 = vmatpush.msrb.mxu1 %v234_v21 }
  0x2a   :  { %202 = vmatpush.msrb.mxu0 %v191_v7  ;;  %242 = vmatpush.msrb.mxu1 %v233_v22 }
  0x2c   :  { %203 = vmatpush.msrb.mxu0 %v190_v8  ;;  %243 = vmatpush.msrb.mxu1 %v232_v23 }
  0x2e   :  { %204 = vmatpush.msrb.mxu0 %v189_v9  ;;  %244 = vmatpush.msrb.mxu1 %v231_v24 }
  0x30   :  { %205 = vmatpush.msrb.mxu0 %v188_v10  ;;  %245 = vmatpush.msrb.mxu1 %v230_v25 }
  0x32   :  { %206 = vmatpush.msrb.mxu0 %v187_v11  ;;  %246 = vmatpush.msrb.mxu1 %v229_v26 }
  0x34   :  { %207 = vmatpush.msrb.mxu0 %v186_v12  ;;  %247 = vmatpush.msrb.mxu1 %v228_v27 }
  0x36   :  { %208 = vmatpush.msrb.mxu0 %v185_v13  ;;  %248 = vmatpush.msrb.mxu1 %v227_v28 }
  0x38   :  { %209 = vmatpush.msrb.mxu0 %v184_v14  ;;  %249 = vmatpush.msrb.mxu1 %v226_v29 }
  0x3a   :  { %210 = vmatpush.msrb.mxu0 %v183_v15  ;;  %250 = vmatpush.msrb.mxu1 %v225_v31 }
  0x3c   :  { %211 = vmatpush.msrb.mxu0 %v182_v16  ;;  %251 = vmatpush.msrb.mxu1 %v224_v33 }
  0x3e   :  { %212 = vmatpush.msrb.mxu0 %v181_v17  ;;  %252 = vmatpush.msrb.mxu1 %v223_v36 }
  0x40   :  { %213 = vmatpush.msrb.mxu0 %v180_v18  ;;  %253 = vmatpush.msrb.mxu1 %v222_v43 }
  0x42   :  { %214 = vmatpush.msrb.mxu0 %v179_v19  ;;  %254 = vmatpush.msrb.mxu1 %v221_v44 }
  0x44   :  { %255 = vmatpush.msrb.mxu1 %v220_v45 }
  0xa0   :  { %v115_v32 = vpop.f32.mrf.mxu0 }
  0xa1   :  { %v116_v34 = vadd.f32 %v265_v30, %v115_v32 }
  0xa2   :  { %v135_v35 = vpop.f32.mrf.mxu1 }
  0xa3   :  { %v136_v37 = vadd.f32 %v135_v35, %v116_v34 }
  0xa5   :  { %v155_v38 = vpop.f32.mrf.mxu2 }
  0xa6   :  { %v156_v39 = vadd.f32 %v155_v38, %v136_v37  ;;  %v175_v40 = vpop.f32.mrf.mxu3 }
  0xa8   :  { %v176_v41 = vadd.f32 %v175_v40, %v156_v39 }
  0xaa   :  { %v178_v42 = vmax.f32 %v176_v41, 0.0 }
  0xac   :  { %215 = vmatmul.f32.vlgmr.msrb.gmra.mxu0 %v178_v42 }
 0x129   :  { %v216_v47 = vpop.f32.mrf.mxu0 }
 0x12a   :  { %v217_v48 = vadd.f32 %v266_v46, %v216_v47 }
 0x12c   :  { %v219_v49 = vmax.f32 %v217_v48, 0.0 }
 0x12e   :  { %256 = vmatmul.f32.vlgmr.msrb.gmra.mxu1 %v219_v49 }
 0x1ab   :  { %v257_v51 = vpop.f32.mrf.mxu1 }
 0x1ac   :  { %v258_v52 = vadd.f32 %v267_v50, %v257_v51 }
 0x1ae   :  { %260 = vst [vmem:[%s627_s7] sm:$0xff] %v258_v52 }

</bundles_post_ra>
